<compile_context>
chip_gen: v7x
topology: tpu7x:2x2x1
jax: 0.10.0
libtpu: 0.0.40
codegen_flags: <defaults>
</compile_context>

<pallas_src>
import functools
import math

import jax
import jax.numpy as jnp
from jax.experimental import pallas as pl
from jax.experimental.pallas import tpu as pltpu


_SQRT_2_OVER_PI = math.sqrt(2.0 / math.pi)


def _gelu_tanh(x):
    return 0.5 * x * (1.0 + jnp.tanh(_SQRT_2_OVER_PI * (x + 0.044715 * x * x * x)))


def _layernorm(x, gamma_row, beta_row, eps=1e-5):
    # Matches torch.nn.LayerNorm (biased variance, eps inside the sqrt). f32 math.
    mu = jnp.mean(x, axis=-1, keepdims=True)
    xc = x - mu
    var = jnp.mean(xc * xc, axis=-1, keepdims=True)
    return xc * jax.lax.rsqrt(var + eps) * gamma_row + beta_row


def transformer_kernel(tok_ref,                      # SMEM (B, S) int32 (scalar prefetch)
                       tok_emb_ref, pos_ref,
                       ln1_g_ref, ln1_b_ref, wqkv_ref, wo_ref,
                       ln2_g_ref, ln2_b_ref, w1_ref, b1_ref, w2_ref, b2_ref,
                       lnf_g_ref, lnf_b_ref, wout_ref,
                       o_ref, h_ref, *, n_heads, seq_len, dim):
    b = pl.program_id(0)                             # batch element (parallel axis)
    l = pl.program_id(1)                             # layer          (arbitrary axis)
    n_layers = pl.num_programs(1)
    head_dim = dim // n_heads
    mm_dtype = wqkv_ref.dtype                        # bf16 on v6e/v7x, f32 otherwise

    # ---- token + positional embedding (only on the first layer step) ----
    @pl.when(l == 0)
    def _():
        for s in range(seq_len):                     # static unroll (S = 8)
            t = tok_ref[b, s]                        # scalar read from SMEM
            # dynamic leading-axis row gather from the (V, 1, D) table
            h_ref[pl.ds(s, 1), :] = tok_emb_ref[t] + pos_ref[pl.ds(s, 1), :]
        # input dropout: identity in eval mode

    h = h_ref[...]                                   # (S, D) f32

    # ---------------- attention block ----------------
    x_ln = _layernorm(h, ln1_g_ref[0], ln1_b_ref[0])
    # fused QKV projection; the 1/sqrt(head_dim) scale is pre-folded into Q cols
    qkv = jnp.dot(x_ln.astype(mm_dtype), wqkv_ref[0],
                  preferred_element_type=jnp.float32)          # (S, 3D) f32
    head_out = []
    for hi in range(n_heads):                        # static unroll (H = 4)
        c0 = hi * head_dim
        qh = qkv[:, c0:c0 + head_dim]                            # (S, hd)
        kh = qkv[:, dim + c0:dim + c0 + head_dim]
        vh = qkv[:, 2 * dim + c0:2 * dim + c0 + head_dim]
        scores = jnp.einsum("qd,kd->qk", qh.astype(mm_dtype), kh.astype(mm_dtype),
                            preferred_element_type=jnp.float32)  # (S, S)
        scores = scores - jnp.max(scores, axis=-1, keepdims=True)
        p = jnp.exp(scores)
        # exact divide for PyTorch softmax parity; at large S use
        # pl.reciprocal(denom, approx=True) to push it onto the EUP slot.
        p = p / jnp.sum(p, axis=-1, keepdims=True)
        head_out.append(jnp.dot(p.astype(mm_dtype), vh.astype(mm_dtype),
                                preferred_element_type=jnp.float32))  # (S, hd)
    attn = jnp.concatenate(head_out, axis=-1)                         # (S, D)
    h = h + jnp.dot(attn.astype(mm_dtype), wo_ref[0],
                    preferred_element_type=jnp.float32)
    # attention / residual dropout: identity in eval mode

    # ---------------- feed-forward block ----------------
    x_ln = _layernorm(h, ln2_g_ref[0], ln2_b_ref[0])
    ff = jnp.dot(x_ln.astype(mm_dtype), w1_ref[0],
                 preferred_element_type=jnp.float32) + b1_ref[0]
    ff = _gelu_tanh(ff)                                               # f32 elementwise
    ff = jnp.dot(ff.astype(mm_dtype), w2_ref[0],
                 preferred_element_type=jnp.float32) + b2_ref[0]
    h = h + ff
    h_ref[...] = h                                   # carry to the next layer step

    # ---- final norm + lane-dense vocab head (only on the last layer step) ----
    @pl.when(l == n_layers - 1)
    def _():
        hf = _layernorm(h, lnf_g_ref[...], lnf_b_ref[...])
        o_ref[...] = jnp.dot(hf.astype(mm_dtype), wout_ref[...],
                             preferred_element_type=jnp.float32).astype(o_ref.dtype)


def transformer_pallas(tokens, kp, *, n_heads, vocab_size):
    """tokens: (B, S) int32; kp: kernel-layout params (see to_kernel_params)."""
    B, S = tokens.shape
    D = kp["pos_emb"].shape[1]
    L = kp["wqkv"].shape[0]
    v_pad = kp["w_out"].shape[1]
    tok = tokens.astype(jnp.int32)                   # scalar-prefetched -> SMEM

    per_layer = lambda b, l, tok: (l, 0, 0)          # stream one layer's weights per step
    const2 = lambda b, l, tok: (0, 0)
    const3 = lambda b, l, tok: (0, 0, 0)

    in_specs = [
        pl.BlockSpec(kp["tok_emb"].shape, const3),   # (V, 1, D) embedding table
        pl.BlockSpec(kp["pos_emb"].shape, const2),   # (S, D)    positional rows
        pl.BlockSpec((1, 1, D), per_layer),          # ln1_g
        pl.BlockSpec((1, 1, D), per_layer),          # ln1_b
        pl.BlockSpec((1, D, 3 * D), per_layer),      # wqkv (Q pre-scaled)
        pl.BlockSpec((1, D, D), per_layer),          # wo
        pl.BlockSpec((1, 1, D), per_layer),          # ln2_g
        pl.BlockSpec((1, 1, D), per_layer),          # ln2_b
        pl.BlockSpec((1, D, 4 * D), per_layer),      # w1
        pl.BlockSpec((1, 1, 4 * D), per_layer),      # b1
        pl.BlockSpec((1, 4 * D, D), per_layer),      # w2
        pl.BlockSpec((1, 1, D), per_layer),          # b2
        pl.BlockSpec((1, D), const2),                # lnf_g
        pl.BlockSpec((1, D), const2),                # lnf_b
        pl.BlockSpec((D, v_pad), const2),            # w_out (lane-dense padded)
    ]
    out_spec = pl.BlockSpec((S, v_pad), lambda b, l, tok: (b, 0))

    kernel = functools.partial(transformer_kernel, n_heads=n_heads, seq_len=S, dim=D)
    out = pl.pallas_call(
        kernel,
        out_shape=jax.ShapeDtypeStruct((B * S, v_pad), jnp.float32),
        grid_spec=pltpu.PrefetchScalarGridSpec(
            num_scalar_prefetch=1,
            grid=(B, L),                             # batch parallel, layers pipelined
            in_specs=in_specs,
            out_specs=out_spec,
            scratch_shapes=[pltpu.VMEM((S, D), jnp.float32)],   # carried hidden state
        ),
        compiler_params=pltpu.CompilerParams(
            dimension_semantics=("parallel", "arbitrary"),
            vmem_limit_bytes=32 * 1024 * 1024),      # explicit budget (v7x: 64 MiB phys)
    )(tok, kp["tok_emb"], kp["pos_emb"],
      kp["ln1_g"], kp["ln1_b"], kp["wqkv"], kp["wo"],
      kp["ln2_g"], kp["ln2_b"], kp["w1"], kp["b1"], kp["w2"], kp["b2"],
      kp["lnf_g"], kp["lnf_b"], kp["w_out"])
    return out[:, :vocab_size].reshape(B, S, vocab_size)


# ----------------------------- parameters ---------------------------------

def make_params(key, *, n_layers, dim, n_heads, vocab_size, max_seq_len):
    """PyTorch-convention parameters (Linear weights are (out, in))."""
    hidden = 4 * dim
    keys = iter(jax.random.split(key, 64))

    def lin(k, out_f, in_f):
        bound = 1.0 / math.sqrt(in_f)
        return jax.random.uniform(k, (out_f, in_f), jnp.float32, -bound, bound)

    def bias(k, n, in_f):
        bound = 1.0 / math.sqrt(in_f)
        return jax.random.uniform(k, (n,), jnp.float32, -bound, bound)

    def ln_pair():
        g = 1.0 + 0.1 * jax.random.normal(next(keys), (dim,), jnp.float32)
        b = 0.1 * jax.random.normal(next(keys), (dim,), jnp.float32)
        return g, b

    tp = {
        "tok_emb": jax.random.normal(next(keys), (vocab_size, dim), jnp.float32),
        "pos_emb": jax.random.normal(next(keys), (max_seq_len, dim), jnp.float32),
        "layers": [],
    }
    for _ in range(n_layers):
        g1, b1_ = ln_pair()
        layer = {"ln1_g": g1, "ln1_b": b1_,
                 "wq": lin(next(keys), dim, dim), "wk": lin(next(keys), dim, dim),
                 "wv": lin(next(keys), dim, dim), "wo": lin(next(keys), dim, dim)}
        g2, b2_ = ln_pair()
        layer.update({"ln2_g": g2, "ln2_b": b2_,
                      "w1": lin(next(keys), hidden, dim), "b1": bias(next(keys), hidden, dim),
                      "w2": lin(next(keys), dim, hidden), "b2": bias(next(keys), dim, hidden)})
        tp["layers"].append(layer)
    gf, bf = ln_pair()
    tp["lnf_g"], tp["lnf_b"] = gf, bf
    tp["w_out"] = lin(next(keys), vocab_size, dim)
    return tp


def to_kernel_params(tp, *, n_heads, seq_len, matmul_dtype=jnp.float32):
    """One-time layout prep (parameter-setup time, NOT per forward call):
    transpose Linear weights to (in, out), fuse Wq/Wk/Wv into one (D, 3D)
    projection with the 1/sqrt(head_dim) scale folded into the Q columns,
    stack per-layer tensors on a leading layer axis (for per-layer BlockSpec
    streaming), reshape the embedding table to (V, 1, D) for dynamic row
    gather, zero-pad the vocab head to a 128-lane multiple (lane-dense store),
    and cast matmul operands to `matmul_dtype` (bf16 on v6e/v7x)."""
    ls = tp["layers"]
    D = tp["tok_emb"].shape[1]
    V, _ = tp["w_out"].shape
    scale = 1.0 / math.sqrt(D // n_heads)
    v_pad = ((V + 127) // 128) * 128

    stack3 = lambda name: jnp.stack([l[name] for l in ls])[:, None, :]     # (L, 1, n)
    w_out_pad = jnp.zeros((D, v_pad), jnp.float32).at[:, :V].set(tp["w_out"].T)

    return {
        "tok_emb": tp["tok_emb"][:, None, :],                              # (V, 1, D) f32
        "pos_emb": tp["pos_emb"][:seq_len],                                # (S, D)    f32
        "ln1_g": stack3("ln1_g"), "ln1_b": stack3("ln1_b"),
        "wqkv": jnp.stack([jnp.concatenate([l["wq"].T * scale, l["wk"].T, l["wv"].T],
                                           axis=1) for l in ls]).astype(matmul_dtype),
        "wo": jnp.stack([l["wo"].T for l in ls]).astype(matmul_dtype),     # (L, D, D)
        "ln2_g": stack3("ln2_g"), "ln2_b": stack3("ln2_b"),
        "w1": jnp.stack([l["w1"].T for l in ls]).astype(matmul_dtype),     # (L, D, 4D)
        "b1": stack3("b1"),
        "w2": jnp.stack([l["w2"].T for l in ls]).astype(matmul_dtype),     # (L, 4D, D)
        "b2": stack3("b2"),
        "lnf_g": tp["lnf_g"][None, :], "lnf_b": tp["lnf_b"][None, :],      # (1, D)
        "w_out": w_out_pad.astype(matmul_dtype),                           # (D, v_pad)
    }


# ----------------------------- reference ----------------------------------

def _layernorm_ref(x, g, b, eps=1e-5):
    mu = jnp.mean(x, axis=-1, keepdims=True)
    var = jnp.mean((x - mu) ** 2, axis=-1, keepdims=True)
    return (x - mu) * jax.lax.rsqrt(var + eps) * g + b


def transformer_reference(tokens, tp, *, n_layers, n_heads):
    """Pure-JAX reference mirroring the PyTorch Transformer.forward (eval mode,
    exact erf-GELU, exact softmax)."""
    B, S = tokens.shape
    D = tp["tok_emb"].shape[1]
    hd = D // n_heads
    h = tp["tok_emb"][tokens] + tp["pos_emb"][:S][None, :, :]
    for l in range(n_layers):
        lp = tp["layers"][l]
        x = _layernorm_ref(h, lp["ln1_g"], lp["ln1_b"])
        q = (x @ lp["wq"].T).reshape(B, S, n_heads, hd).transpose(0, 2, 1, 3)
        k = (x @ lp["wk"].T).reshape(B, S, n_heads, hd).transpose(0, 2, 1, 3)
        v = (x @ lp["wv"].T).reshape(B, S, n_heads, hd).transpose(0, 2, 1, 3)
        s = jnp.einsum("bhqd,bhkd->bhqk", q, k) / math.sqrt(hd)
        p = jax.nn.softmax(s, axis=-1)
        o = jnp.einsum("bhqk,bhkd->bhqd", p, v)
        o = o.transpose(0, 2, 1, 3).reshape(B, S, D)
        h = h + o @ lp["wo"].T
        x = _layernorm_ref(h, lp["ln2_g"], lp["ln2_b"])
        ff = x @ lp["w1"].T + lp["b1"]
        ff = 0.5 * ff * (1.0 + jax.lax.erf(ff / math.sqrt(2.0)))   # exact GELU
        ff = ff @ lp["w2"].T + lp["b2"]
        h = h + ff
    h = _layernorm_ref(h, tp["lnf_g"], tp["lnf_b"])
    return h @ tp["w_out"].T


if __name__ == "__main__":
    # ModelArgs: n_layers=2, vocab_size=8, max_seq_len=16, dim=16, n_heads=4.
    N_LAYERS, VOCAB, MAX_SEQ, DIM, N_HEADS = 2, 8, 16, 16, 4
    B, S = 2, 8

    key = jax.random.PRNGKey(0)
    k_params, k_tok = jax.random.split(key)
    torch_params = make_params(k_params, n_layers=N_LAYERS, dim=DIM, n_heads=N_HEADS,
                               vocab_size=VOCAB, max_seq_len=MAX_SEQ)
    tokens = jax.random.randint(k_tok, (B, S), 0, VOCAB, dtype=jnp.int32)
    ref = transformer_reference(tokens, torch_params, n_layers=N_LAYERS, n_heads=N_HEADS)

    # --- primary check: f32 matmul operands (tight tolerance; only the
    #     tanh-GELU approximation differs from the PyTorch math) ---
    kp_f32 = to_kernel_params(torch_params, n_heads=N_HEADS, seq_len=S,
                              matmul_dtype=jnp.float32)
    out_f32 = transformer_pallas(tokens, kp_f32, n_heads=N_HEADS, vocab_size=VOCAB)
    out_f32 = jax.block_until_ready(out_f32)
    assert out_f32.shape == (B, S, VOCAB)
    assert jnp.allclose(out_f32, ref, atol=2e-2, rtol=2e-2), "f32 kernel mismatch"

    # --- production setting for v6e/v7x: bf16 matmul operands, f32 MXU
    #     accumulation, f32 LayerNorm/softmax/GELU (looser tolerance) ---
    kp_bf16 = to_kernel_params(torch_params, n_heads=N_HEADS, seq_len=S,
                               matmul_dtype=jnp.bfloat16)
    out_bf16 = transformer_pallas(tokens, kp_bf16, n_heads=N_HEADS, vocab_size=VOCAB)
    out_bf16 = jax.block_until_ready(out_bf16)
    assert out_bf16.shape == (B, S, VOCAB)
    assert jnp.allclose(out_bf16, ref, atol=1e-1, rtol=1e-1), "bf16 kernel mismatch"

    print("KERNEL_OK")
</pallas_src>

<mosaic_0001>
module attributes {stable_mosaic.version = 11 : i64} {
  func.func @transformer_kernel(%arg0: i32, %arg1: i32, %arg2: memref<2x8xi32, #tpu.memory_space<smem>>, %arg3: memref<8x1x16xf32, #tpu.memory_space<vmem>>, %arg4: memref<8x16xf32, #tpu.memory_space<vmem>>, %arg5: memref<1x1x16xf32, #tpu.memory_space<vmem>>, %arg6: memref<1x1x16xf32, #tpu.memory_space<vmem>>, %arg7: memref<1x16x48xf32, #tpu.memory_space<vmem>>, %arg8: memref<1x16x16xf32, #tpu.memory_space<vmem>>, %arg9: memref<1x1x16xf32, #tpu.memory_space<vmem>>, %arg10: memref<1x1x16xf32, #tpu.memory_space<vmem>>, %arg11: memref<1x16x64xf32, #tpu.memory_space<vmem>>, %arg12: memref<1x1x64xf32, #tpu.memory_space<vmem>>, %arg13: memref<1x64x16xf32, #tpu.memory_space<vmem>>, %arg14: memref<1x1x16xf32, #tpu.memory_space<vmem>>, %arg15: memref<1x16xf32, #tpu.memory_space<vmem>>, %arg16: memref<1x16xf32, #tpu.memory_space<vmem>>, %arg17: memref<16x128xf32, #tpu.memory_space<vmem>>, %arg18: memref<8x128xf32, #tpu.memory_space<vmem>>, %arg19: memref<8x16xf32, #tpu.memory_space<vmem>>) attributes {dimension_semantics = [#tpu.dimension_semantics<parallel>, #tpu.dimension_semantics<arbitrary>], iteration_bounds = array<i64: 2, 2>, scalar_prefetch = 1 : i64, scratch_operands = 1 : i64, tpu.core_type = #tpu.core_type<tc>, window_params = [{pipeline_mode = #tpu.pipeline_mode<synchronous>, transform_indices = @transform_0, window_bounds = array<i64: 8, 1, 16>}, {pipeline_mode = #tpu.pipeline_mode<synchronous>, transform_indices = @transform_1, window_bounds = array<i64: 8, 16>}, {transform_indices = @transform_2, window_bounds = array<i64: 1, 1, 16>}, {transform_indices = @transform_3, window_bounds = array<i64: 1, 1, 16>}, {transform_indices = @transform_4, window_bounds = array<i64: 1, 16, 48>}, {transform_indices = @transform_5, window_bounds = array<i64: 1, 16, 16>}, {transform_indices = @transform_6, window_bounds = array<i64: 1, 1, 16>}, {transform_indices = @transform_7, window_bounds = array<i64: 1, 1, 16>}, {transform_indices = @transform_8, window_bounds = array<i64: 1, 16, 64>}, {transform_indices = @transform_9, window_bounds = array<i64: 1, 1, 64>}, {transform_indices = @transform_10, window_bounds = array<i64: 1, 64, 16>}, {transform_indices = @transform_11, window_bounds = array<i64: 1, 1, 16>}, {pipeline_mode = #tpu.pipeline_mode<synchronous>, transform_indices = @transform_12, window_bounds = array<i64: 1, 16>}, {pipeline_mode = #tpu.pipeline_mode<synchronous>, transform_indices = @transform_13, window_bounds = array<i64: 1, 16>}, {pipeline_mode = #tpu.pipeline_mode<synchronous>, transform_indices = @transform_14, window_bounds = array<i64: 16, 128>}, {transform_indices = @transform_15, window_bounds = array<i64: 8, 128>}]} {
    %c0_i32 = arith.constant 0 : i32
    %0 = arith.cmpi eq, %arg1, %c0_i32 : i32
    %1 = arith.extui %0 : i1 to i32
    %c0_i32_0 = arith.constant 0 : i32
    %2 = arith.cmpi ne, %1, %c0_i32_0 : i32
    scf.if %2 {
      %148 = arith.index_cast %arg0 : i32 to index
      %c0_68 = arith.constant 0 : index
      %149 = memref.load %arg2[%148, %c0_68] : memref<2x8xi32, #tpu.memory_space<smem>>
      %150 = arith.index_cast %149 : i32 to index
      %c0_69 = arith.constant 0 : index
      %c0_70 = arith.constant 0 : index
      %151 = vector.load %arg3[%150, %c0_69, %c0_70] : memref<8x1x16xf32, #tpu.memory_space<vmem>>, vector<1x1x16xf32>
      %152 = vector.shape_cast %151 : vector<1x1x16xf32> to vector<1x16xf32>
      %c0_71 = arith.constant 0 : index
      %c0_72 = arith.constant 0 : index
      %153 = vector.load %arg4[%c0_71, %c0_72] : memref<8x16xf32, #tpu.memory_space<vmem>>, vector<1x16xf32>
      %154 = arith.addf %152, %153 : vector<1x16xf32>
      %c0_73 = arith.constant 0 : index
      %c0_74 = arith.constant 0 : index
      %155 = vector.load %arg19[%c0_73, %c0_74] : memref<8x16xf32, #tpu.memory_space<vmem>>, vector<1x16xf32>
      tpu.vector_store %arg19[%c0_73, %c0_74], %154 {strides = array<i32>} : memref<8x16xf32, #tpu.memory_space<vmem>>, vector<1x16xf32>,
      %156 = arith.index_cast %arg0 : i32 to index
      %c1 = arith.constant 1 : index
      %157 = memref.load %arg2[%156, %c1] : memref<2x8xi32, #tpu.memory_space<smem>>
      %158 = arith.index_cast %157 : i32 to index
      %c0_75 = arith.constant 0 : index
      %c0_76 = arith.constant 0 : index
      %159 = vector.load %arg3[%158, %c0_75, %c0_76] : memref<8x1x16xf32, #tpu.memory_space<vmem>>, vector<1x1x16xf32>
      %160 = vector.shape_cast %159 : vector<1x1x16xf32> to vector<1x16xf32>
      %c1_77 = arith.constant 1 : index
      %c0_78 = arith.constant 0 : index
      %161 = vector.load %arg4[%c1_77, %c0_78] : memref<8x16xf32, #tpu.memory_space<vmem>>, vector<1x16xf32>
      %162 = arith.addf %160, %161 : vector<1x16xf32>
      %c1_79 = arith.constant 1 : index
      %c0_80 = arith.constant 0 : index
      %163 = vector.load %arg19[%c1_79, %c0_80] : memref<8x16xf32, #tpu.memory_space<vmem>>, vector<1x16xf32>
      tpu.vector_store %arg19[%c1_79, %c0_80], %162 {strides = array<i32>} : memref<8x16xf32, #tpu.memory_space<vmem>>, vector<1x16xf32>,
      %164 = arith.index_cast %arg0 : i32 to index
      %c2 = arith.constant 2 : index
      %165 = memref.load %arg2[%164, %c2] : memref<2x8xi32, #tpu.memory_space<smem>>
      %166 = arith.index_cast %165 : i32 to index
      %c0_81 = arith.constant 0 : index
      %c0_82 = arith.constant 0 : index
      %167 = vector.load %arg3[%166, %c0_81, %c0_82] : memref<8x1x16xf32, #tpu.memory_space<vmem>>, vector<1x1x16xf32>
      %168 = vector.shape_cast %167 : vector<1x1x16xf32> to vector<1x16xf32>
      %c2_83 = arith.constant 2 : index
      %c0_84 = arith.constant 0 : index
      %169 = vector.load %arg4[%c2_83, %c0_84] : memref<8x16xf32, #tpu.memory_space<vmem>>, vector<1x16xf32>
      %170 = arith.addf %168, %169 : vector<1x16xf32>
      %c2_85 = arith.constant 2 : index
      %c0_86 = arith.constant 0 : index
      %171 = vector.load %arg19[%c2_85, %c0_86] : memref<8x16xf32, #tpu.memory_space<vmem>>, vector<1x16xf32>
      tpu.vector_store %arg19[%c2_85, %c0_86], %170 {strides = array<i32>} : memref<8x16xf32, #tpu.memory_space<vmem>>, vector<1x16xf32>,
      %172 = arith.index_cast %arg0 : i32 to index
      %c3 = arith.constant 3 : index
      %173 = memref.load %arg2[%172, %c3] : memref<2x8xi32, #tpu.memory_space<smem>>
      %174 = arith.index_cast %173 : i32 to index
      %c0_87 = arith.constant 0 : index
      %c0_88 = arith.constant 0 : index
      %175 = vector.load %arg3[%174, %c0_87, %c0_88] : memref<8x1x16xf32, #tpu.memory_space<vmem>>, vector<1x1x16xf32>
      %176 = vector.shape_cast %175 : vector<1x1x16xf32> to vector<1x16xf32>
      %c3_89 = arith.constant 3 : index
      %c0_90 = arith.constant 0 : index
      %177 = vector.load %arg4[%c3_89, %c0_90] : memref<8x16xf32, #tpu.memory_space<vmem>>, vector<1x16xf32>
      %178 = arith.addf %176, %177 : vector<1x16xf32>
      %c3_91 = arith.constant 3 : index
      %c0_92 = arith.constant 0 : index
      %179 = vector.load %arg19[%c3_91, %c0_92] : memref<8x16xf32, #tpu.memory_space<vmem>>, vector<1x16xf32>
      tpu.vector_store %arg19[%c3_91, %c0_92], %178 {strides = array<i32>} : memref<8x16xf32, #tpu.memory_space<vmem>>, vector<1x16xf32>,
      %180 = arith.index_cast %arg0 : i32 to index
      %c4 = arith.constant 4 : index
      %181 = memref.load %arg2[%180, %c4] : memref<2x8xi32, #tpu.memory_space<smem>>
      %182 = arith.index_cast %181 : i32 to index
      %c0_93 = arith.constant 0 : index
      %c0_94 = arith.constant 0 : index
      %183 = vector.load %arg3[%182, %c0_93, %c0_94] : memref<8x1x16xf32, #tpu.memory_space<vmem>>, vector<1x1x16xf32>
      %184 = vector.shape_cast %183 : vector<1x1x16xf32> to vector<1x16xf32>
      %c4_95 = arith.constant 4 : index
      %c0_96 = arith.constant 0 : index
      %185 = vector.load %arg4[%c4_95, %c0_96] : memref<8x16xf32, #tpu.memory_space<vmem>>, vector<1x16xf32>
      %186 = arith.addf %184, %185 : vector<1x16xf32>
      %c4_97 = arith.constant 4 : index
      %c0_98 = arith.constant 0 : index
      %187 = vector.load %arg19[%c4_97, %c0_98] : memref<8x16xf32, #tpu.memory_space<vmem>>, vector<1x16xf32>
      tpu.vector_store %arg19[%c4_97, %c0_98], %186 {strides = array<i32>} : memref<8x16xf32, #tpu.memory_space<vmem>>, vector<1x16xf32>,
      %188 = arith.index_cast %arg0 : i32 to index
      %c5 = arith.constant 5 : index
      %189 = memref.load %arg2[%188, %c5] : memref<2x8xi32, #tpu.memory_space<smem>>
      %190 = arith.index_cast %189 : i32 to index
      %c0_99 = arith.constant 0 : index
      %c0_100 = arith.constant 0 : index
      %191 = vector.load %arg3[%190, %c0_99, %c0_100] : memref<8x1x16xf32, #tpu.memory_space<vmem>>, vector<1x1x16xf32>
      %192 = vector.shape_cast %191 : vector<1x1x16xf32> to vector<1x16xf32>
      %c5_101 = arith.constant 5 : index
      %c0_102 = arith.constant 0 : index
      %193 = vector.load %arg4[%c5_101, %c0_102] : memref<8x16xf32, #tpu.memory_space<vmem>>, vector<1x16xf32>
      %194 = arith.addf %192, %193 : vector<1x16xf32>
      %c5_103 = arith.constant 5 : index
      %c0_104 = arith.constant 0 : index
      %195 = vector.load %arg19[%c5_103, %c0_104] : memref<8x16xf32, #tpu.memory_space<vmem>>, vector<1x16xf32>
      tpu.vector_store %arg19[%c5_103, %c0_104], %194 {strides = array<i32>} : memref<8x16xf32, #tpu.memory_space<vmem>>, vector<1x16xf32>,
      %196 = arith.index_cast %arg0 : i32 to index
      %c6 = arith.constant 6 : index
      %197 = memref.load %arg2[%196, %c6] : memref<2x8xi32, #tpu.memory_space<smem>>
      %198 = arith.index_cast %197 : i32 to index
      %c0_105 = arith.constant 0 : index
      %c0_106 = arith.constant 0 : index
      %199 = vector.load %arg3[%198, %c0_105, %c0_106] : memref<8x1x16xf32, #tpu.memory_space<vmem>>, vector<1x1x16xf32>
      %200 = vector.shape_cast %199 : vector<1x1x16xf32> to vector<1x16xf32>
      %c6_107 = arith.constant 6 : index
      %c0_108 = arith.constant 0 : index
      %201 = vector.load %arg4[%c6_107, %c0_108] : memref<8x16xf32, #tpu.memory_space<vmem>>, vector<1x16xf32>
      %202 = arith.addf %200, %201 : vector<1x16xf32>
      %c6_109 = arith.constant 6 : index
      %c0_110 = arith.constant 0 : index
      %203 = vector.load %arg19[%c6_109, %c0_110] : memref<8x16xf32, #tpu.memory_space<vmem>>, vector<1x16xf32>
      tpu.vector_store %arg19[%c6_109, %c0_110], %202 {strides = array<i32>} : memref<8x16xf32, #tpu.memory_space<vmem>>, vector<1x16xf32>,
      %204 = arith.index_cast %arg0 : i32 to index
      %c7 = arith.constant 7 : index
      %205 = memref.load %arg2[%204, %c7] : memref<2x8xi32, #tpu.memory_space<smem>>
      %206 = arith.index_cast %205 : i32 to index
      %c0_111 = arith.constant 0 : index
      %c0_112 = arith.constant 0 : index
      %207 = vector.load %arg3[%206, %c0_111, %c0_112] : memref<8x1x16xf32, #tpu.memory_space<vmem>>, vector<1x1x16xf32>
      %208 = vector.shape_cast %207 : vector<1x1x16xf32> to vector<1x16xf32>
      %c7_113 = arith.constant 7 : index
      %c0_114 = arith.constant 0 : index
      %209 = vector.load %arg4[%c7_113, %c0_114] : memref<8x16xf32, #tpu.memory_space<vmem>>, vector<1x16xf32>
      %210 = arith.addf %208, %209 : vector<1x16xf32>
      %c7_115 = arith.constant 7 : index
      %c0_116 = arith.constant 0 : index
      %211 = vector.load %arg19[%c7_115, %c0_116] : memref<8x16xf32, #tpu.memory_space<vmem>>, vector<1x16xf32>
      tpu.vector_store %arg19[%c7_115, %c0_116], %210 {strides = array<i32>} : memref<8x16xf32, #tpu.memory_space<vmem>>, vector<1x16xf32>,
    } else {
    }
    %c0 = arith.constant 0 : index
    %c0_1 = arith.constant 0 : index
    %3 = vector.load %arg19[%c0, %c0_1] : memref<8x16xf32, #tpu.memory_space<vmem>>, vector<8x16xf32>
    %c0_2 = arith.constant 0 : index
    %c0_3 = arith.constant 0 : index
    %c0_4 = arith.constant 0 : index
    %4 = vector.load %arg5[%c0_2, %c0_3, %c0_4] : memref<1x1x16xf32, #tpu.memory_space<vmem>>, vector<1x1x16xf32>
    %5 = vector.shape_cast %4 : vector<1x1x16xf32> to vector<1x16xf32>
    %c0_5 = arith.constant 0 : index
    %c0_6 = arith.constant 0 : index
    %c0_7 = arith.constant 0 : index
    %6 = vector.load %arg6[%c0_5, %c0_6, %c0_7] : memref<1x1x16xf32, #tpu.memory_space<vmem>>, vector<1x1x16xf32>
    %7 = vector.shape_cast %6 : vector<1x1x16xf32> to vector<1x16xf32>
    %cst = arith.constant dense<0.000000e+00> : vector<8xf32>
    %8 = vector.multi_reduction <add>, %3, %cst [1] : vector<8x16xf32> to vector<8xf32>
    %9 = vector.shape_cast %8 : vector<8xf32> to vector<8x1xf32>
    %cst_8 = arith.constant 1.600000e+01 : f32
    %10 = vector.broadcast %cst_8 : f32 to vector<8x1xf32>
    %11 = arith.divf %9, %10 : vector<8x1xf32>
    %12 = vector.broadcast %11 : vector<8x1xf32> to vector<8x16xf32>
    %13 = arith.subf %3, %12 : vector<8x16xf32>
    %14 = arith.mulf %13, %13 : vector<8x16xf32>
    %cst_9 = arith.constant dense<0.000000e+00> : vector<8xf32>
    %15 = vector.multi_reduction <add>, %14, %cst_9 [1] : vector<8x16xf32> to vector<8xf32>
    %16 = vector.shape_cast %15 : vector<8xf32> to vector<8x1xf32>
    %cst_10 = arith.constant 1.600000e+01 : f32
    %17 = vector.broadcast %cst_10 : f32 to vector<8x1xf32>
    %18 = arith.divf %16, %17 : vector<8x1xf32>
    %cst_11 = arith.constant 9.99999974E-6 : f32
    %19 = vector.broadcast %cst_11 : f32 to vector<8x1xf32>
    %20 = arith.addf %18, %19 : vector<8x1xf32>
    %21 = math.rsqrt %20 : vector<8x1xf32>
    %22 = vector.broadcast %21 : vector<8x1xf32> to vector<8x16xf32>
    %23 = arith.mulf %13, %22 : vector<8x16xf32>
    %24 = vector.broadcast %5 : vector<1x16xf32> to vector<8x16xf32>
    %25 = arith.mulf %23, %24 : vector<8x16xf32>
    %26 = vector.broadcast %7 : vector<1x16xf32> to vector<8x16xf32>
    %27 = arith.addf %25, %26 : vector<8x16xf32>
    %c0_12 = arith.constant 0 : index
    %c0_13 = arith.constant 0 : index
    %c0_14 = arith.constant 0 : index
    %28 = vector.load %arg7[%c0_12, %c0_13, %c0_14] : memref<1x16x48xf32, #tpu.memory_space<vmem>>, vector<1x16x48xf32>
    %29 = vector.shape_cast %28 : vector<1x16x48xf32> to vector<16x48xf32>
    %cst_15 = arith.constant dense<0.000000e+00> : vector<8x48xf32>
    %30 = tpu.matmul %27, %29, %cst_15 {dimension_numbers = #tpu.dot_dimension_numbers<[1], [0], [0], [1], [0, 0, 1, 1], [], []>} : vector<8x16xf32>, vector<16x48xf32>, vector<8x48xf32> -> vector<8x48xf32>
    %31 = vector.extract_strided_slice %30 {offsets = [0, 0], sizes = [8, 4], strides = [1, 1]} : vector<8x48xf32> to vector<8x4xf32>
    %32 = vector.extract_strided_slice %30 {offsets = [0, 16], sizes = [8, 4], strides = [1, 1]} : vector<8x48xf32> to vector<8x4xf32>
    %33 = vector.extract_strided_slice %30 {offsets = [0, 32], sizes = [8, 4], strides = [1, 1]} : vector<8x48xf32> to vector<8x4xf32>
    "tpu.trace_start"() <{level = 10 : i32, message = "qd,kd->qk"}> : () -> ()
    %cst_16 = arith.constant dense<0.000000e+00> : vector<8x8xf32>
    %34 = tpu.matmul %31, %32, %cst_16 {dimension_numbers = #tpu.dot_dimension_numbers<[1], [1], [0], [0], [0, 0, 1, 0], [], []>} : vector<8x4xf32>, vector<8x4xf32>, vector<8x8xf32> -> vector<8x8xf32>
    "tpu.trace_stop"() : () -> ()
    %cst_17 = arith.constant dense<0xFF800000> : vector<8xf32>
    %35 = vector.multi_reduction <maximumf>, %34, %cst_17 [1] : vector<8x8xf32> to vector<8xf32>
    %36 = vector.shape_cast %35 : vector<8xf32> to vector<8x1xf32>
    %37 = vector.broadcast %36 : vector<8x1xf32> to vector<8x8xf32>
    %38 = arith.subf %34, %37 : vector<8x8xf32>
    %39 = math.exp %38 : vector<8x8xf32>
    %cst_18 = arith.constant dense<0.000000e+00> : vector<8xf32>
    %40 = vector.multi_reduction <add>, %39, %cst_18 [1] : vector<8x8xf32> to vector<8xf32>
    %41 = vector.shape_cast %40 : vector<8xf32> to vector<8x1xf32>
    %42 = vector.broadcast %41 : vector<8x1xf32> to vector<8x8xf32>
    %43 = arith.divf %39, %42 : vector<8x8xf32>
    %cst_19 = arith.constant dense<0.000000e+00> : vector<8x4xf32>
    %44 = tpu.matmul %43, %33, %cst_19 {dimension_numbers = #tpu.dot_dimension_numbers<[1], [0], [0], [1], [0, 0, 1, 1], [], []>} : vector<8x8xf32>, vector<8x4xf32>, vector<8x4xf32> -> vector<8x4xf32>
    %45 = vector.extract_strided_slice %30 {offsets = [0, 4], sizes = [8, 4], strides = [1, 1]} : vector<8x48xf32> to vector<8x4xf32>
    %46 = vector.extract_strided_slice %30 {offsets = [0, 20], sizes = [8, 4], strides = [1, 1]} : vector<8x48xf32> to vector<8x4xf32>
    %47 = vector.extract_strided_slice %30 {offsets = [0, 36], sizes = [8, 4], strides = [1, 1]} : vector<8x48xf32> to vector<8x4xf32>
    "tpu.trace_start"() <{level = 10 : i32, message = "qd,kd->qk"}> : () -> ()
    %cst_20 = arith.constant dense<0.000000e+00> : vector<8x8xf32>
    %48 = tpu.matmul %45, %46, %cst_20 {dimension_numbers = #tpu.dot_dimension_numbers<[1], [1], [0], [0], [0, 0, 1, 0], [], []>} : vector<8x4xf32>, vector<8x4xf32>, vector<8x8xf32> -> vector<8x8xf32>
    "tpu.trace_stop"() : () -> ()
    %cst_21 = arith.constant dense<0xFF800000> : vector<8xf32>
    %49 = vector.multi_reduction <maximumf>, %48, %cst_21 [1] : vector<8x8xf32> to vector<8xf32>
    %50 = vector.shape_cast %49 : vector<8xf32> to vector<8x1xf32>
    %51 = vector.broadcast %50 : vector<8x1xf32> to vector<8x8xf32>
    %52 = arith.subf %48, %51 : vector<8x8xf32>
    %53 = math.exp %52 : vector<8x8xf32>
    %cst_22 = arith.constant dense<0.000000e+00> : vector<8xf32>
    %54 = vector.multi_reduction <add>, %53, %cst_22 [1] : vector<8x8xf32> to vector<8xf32>
    %55 = vector.shape_cast %54 : vector<8xf32> to vector<8x1xf32>
    %56 = vector.broadcast %55 : vector<8x1xf32> to vector<8x8xf32>
    %57 = arith.divf %53, %56 : vector<8x8xf32>
    %cst_23 = arith.constant dense<0.000000e+00> : vector<8x4xf32>
    %58 = tpu.matmul %57, %47, %cst_23 {dimension_numbers = #tpu.dot_dimension_numbers<[1], [0], [0], [1], [0, 0, 1, 1], [], []>} : vector<8x8xf32>, vector<8x4xf32>, vector<8x4xf32> -> vector<8x4xf32>
    %59 = vector.extract_strided_slice %30 {offsets = [0, 8], sizes = [8, 4], strides = [1, 1]} : vector<8x48xf32> to vector<8x4xf32>
    %60 = vector.extract_strided_slice %30 {offsets = [0, 24], sizes = [8, 4], strides = [1, 1]} : vector<8x48xf32> to vector<8x4xf32>
    %61 = vector.extract_strided_slice %30 {offsets = [0, 40], sizes = [8, 4], strides = [1, 1]} : vector<8x48xf32> to vector<8x4xf32>
    "tpu.trace_start"() <{level = 10 : i32, message = "qd,kd->qk"}> : () -> ()
    %cst_24 = arith.constant dense<0.000000e+00> : vector<8x8xf32>
    %62 = tpu.matmul %59, %60, %cst_24 {dimension_numbers = #tpu.dot_dimension_numbers<[1], [1], [0], [0], [0, 0, 1, 0], [], []>} : vector<8x4xf32>, vector<8x4xf32>, vector<8x8xf32> -> vector<8x8xf32>
    "tpu.trace_stop"() : () -> ()
    %cst_25 = arith.constant dense<0xFF800000> : vector<8xf32>
    %63 = vector.multi_reduction <maximumf>, %62, %cst_25 [1] : vector<8x8xf32> to vector<8xf32>
    %64 = vector.shape_cast %63 : vector<8xf32> to vector<8x1xf32>
    %65 = vector.broadcast %64 : vector<8x1xf32> to vector<8x8xf32>
    %66 = arith.subf %62, %65 : vector<8x8xf32>
    %67 = math.exp %66 : vector<8x8xf32>
    %cst_26 = arith.constant dense<0.000000e+00> : vector<8xf32>
    %68 = vector.multi_reduction <add>, %67, %cst_26 [1] : vector<8x8xf32> to vector<8xf32>
    %69 = vector.shape_cast %68 : vector<8xf32> to vector<8x1xf32>
    %70 = vector.broadcast %69 : vector<8x1xf32> to vector<8x8xf32>
    %71 = arith.divf %67, %70 : vector<8x8xf32>
    %cst_27 = arith.constant dense<0.000000e+00> : vector<8x4xf32>
    %72 = tpu.matmul %71, %61, %cst_27 {dimension_numbers = #tpu.dot_dimension_numbers<[1], [0], [0], [1], [0, 0, 1, 1], [], []>} : vector<8x8xf32>, vector<8x4xf32>, vector<8x4xf32> -> vector<8x4xf32>
    %73 = vector.extract_strided_slice %30 {offsets = [0, 12], sizes = [8, 4], strides = [1, 1]} : vector<8x48xf32> to vector<8x4xf32>
    %74 = vector.extract_strided_slice %30 {offsets = [0, 28], sizes = [8, 4], strides = [1, 1]} : vector<8x48xf32> to vector<8x4xf32>
    %75 = vector.extract_strided_slice %30 {offsets = [0, 44], sizes = [8, 4], strides = [1, 1]} : vector<8x48xf32> to vector<8x4xf32>
    "tpu.trace_start"() <{level = 10 : i32, message = "qd,kd->qk"}> : () -> ()
    %cst_28 = arith.constant dense<0.000000e+00> : vector<8x8xf32>
    %76 = tpu.matmul %73, %74, %cst_28 {dimension_numbers = #tpu.dot_dimension_numbers<[1], [1], [0], [0], [0, 0, 1, 0], [], []>} : vector<8x4xf32>, vector<8x4xf32>, vector<8x8xf32> -> vector<8x8xf32>
    "tpu.trace_stop"() : () -> ()
    %cst_29 = arith.constant dense<0xFF800000> : vector<8xf32>
    %77 = vector.multi_reduction <maximumf>, %76, %cst_29 [1] : vector<8x8xf32> to vector<8xf32>
    %78 = vector.shape_cast %77 : vector<8xf32> to vector<8x1xf32>
    %79 = vector.broadcast %78 : vector<8x1xf32> to vector<8x8xf32>
    %80 = arith.subf %76, %79 : vector<8x8xf32>
    %81 = math.exp %80 : vector<8x8xf32>
    %cst_30 = arith.constant dense<0.000000e+00> : vector<8xf32>
    %82 = vector.multi_reduction <add>, %81, %cst_30 [1] : vector<8x8xf32> to vector<8xf32>
    %83 = vector.shape_cast %82 : vector<8xf32> to vector<8x1xf32>
    %84 = vector.broadcast %83 : vector<8x1xf32> to vector<8x8xf32>
    %85 = arith.divf %81, %84 : vector<8x8xf32>
    %cst_31 = arith.constant dense<0.000000e+00> : vector<8x4xf32>
    %86 = tpu.matmul %85, %75, %cst_31 {dimension_numbers = #tpu.dot_dimension_numbers<[1], [0], [0], [1], [0, 0, 1, 1], [], []>} : vector<8x8xf32>, vector<8x4xf32>, vector<8x4xf32> -> vector<8x4xf32>
    %87 = tpu.concatenate %44, %58, %72, %86 in 1 : vector<8x4xf32>, vector<8x4xf32>, vector<8x4xf32>, vector<8x4xf32> -> vector<8x16xf32>
    %c0_32 = arith.constant 0 : index
    %c0_33 = arith.constant 0 : index
    %c0_34 = arith.constant 0 : index
    %88 = vector.load %arg8[%c0_32, %c0_33, %c0_34] : memref<1x16x16xf32, #tpu.memory_space<vmem>>, vector<1x16x16xf32>
    %89 = vector.shape_cast %88 : vector<1x16x16xf32> to vector<16x16xf32>
    %cst_35 = arith.constant dense<0.000000e+00> : vector<8x16xf32>
    %90 = tpu.matmul %87, %89, %cst_35 {dimension_numbers = #tpu.dot_dimension_numbers<[1], [0], [0], [1], [0, 0, 1, 1], [], []>} : vector<8x16xf32>, vector<16x16xf32>, vector<8x16xf32> -> vector<8x16xf32>
    %91 = arith.addf %3, %90 : vector<8x16xf32>
    %c0_36 = arith.constant 0 : index
    %c0_37 = arith.constant 0 : index
    %c0_38 = arith.constant 0 : index
    %92 = vector.load %arg9[%c0_36, %c0_37, %c0_38] : memref<1x1x16xf32, #tpu.memory_space<vmem>>, vector<1x1x16xf32>
    %93 = vector.shape_cast %92 : vector<1x1x16xf32> to vector<1x16xf32>
    %c0_39 = arith.constant 0 : index
    %c0_40 = arith.constant 0 : index
    %c0_41 = arith.constant 0 : index
    %94 = vector.load %arg10[%c0_39, %c0_40, %c0_41] : memref<1x1x16xf32, #tpu.memory_space<vmem>>, vector<1x1x16xf32>
    %95 = vector.shape_cast %94 : vector<1x1x16xf32> to vector<1x16xf32>
    %cst_42 = arith.constant dense<0.000000e+00> : vector<8xf32>
    %96 = vector.multi_reduction <add>, %91, %cst_42 [1] : vector<8x16xf32> to vector<8xf32>
    %97 = vector.shape_cast %96 : vector<8xf32> to vector<8x1xf32>
    %cst_43 = arith.constant 1.600000e+01 : f32
    %98 = vector.broadcast %cst_43 : f32 to vector<8x1xf32>
    %99 = arith.divf %97, %98 : vector<8x1xf32>
    %100 = vector.broadcast %99 : vector<8x1xf32> to vector<8x16xf32>
    %101 = arith.subf %91, %100 : vector<8x16xf32>
    %102 = arith.mulf %101, %101 : vector<8x16xf32>
    %cst_44 = arith.constant dense<0.000000e+00> : vector<8xf32>
    %103 = vector.multi_reduction <add>, %102, %cst_44 [1] : vector<8x16xf32> to vector<8xf32>
    %104 = vector.shape_cast %103 : vector<8xf32> to vector<8x1xf32>
    %cst_45 = arith.constant 1.600000e+01 : f32
    %105 = vector.broadcast %cst_45 : f32 to vector<8x1xf32>
    %106 = arith.divf %104, %105 : vector<8x1xf32>
    %cst_46 = arith.constant 9.99999974E-6 : f32
    %107 = vector.broadcast %cst_46 : f32 to vector<8x1xf32>
    %108 = arith.addf %106, %107 : vector<8x1xf32>
    %109 = math.rsqrt %108 : vector<8x1xf32>
    %110 = vector.broadcast %109 : vector<8x1xf32> to vector<8x16xf32>
    %111 = arith.mulf %101, %110 : vector<8x16xf32>
    %112 = vector.broadcast %93 : vector<1x16xf32> to vector<8x16xf32>
    %113 = arith.mulf %111, %112 : vector<8x16xf32>
    %114 = vector.broadcast %95 : vector<1x16xf32> to vector<8x16xf32>
    %115 = arith.addf %113, %114 : vector<8x16xf32>
    %c0_47 = arith.constant 0 : index
    %c0_48 = arith.constant 0 : index
    %c0_49 = arith.constant 0 : index
    %116 = vector.load %arg11[%c0_47, %c0_48, %c0_49] : memref<1x16x64xf32, #tpu.memory_space<vmem>>, vector<1x16x64xf32>
    %117 = vector.shape_cast %116 : vector<1x16x64xf32> to vector<16x64xf32>
    %cst_50 = arith.constant dense<0.000000e+00> : vector<8x64xf32>
    %118 = tpu.matmul %115, %117, %cst_50 {dimension_numbers = #tpu.dot_dimension_numbers<[1], [0], [0], [1], [0, 0, 1, 1], [], []>} : vector<8x16xf32>, vector<16x64xf32>, vector<8x64xf32> -> vector<8x64xf32>
    %c0_51 = arith.constant 0 : index
    %c0_52 = arith.constant 0 : index
    %c0_53 = arith.constant 0 : index
    %119 = vector.load %arg12[%c0_51, %c0_52, %c0_53] : memref<1x1x64xf32, #tpu.memory_space<vmem>>, vector<1x1x64xf32>
    %120 = vector.shape_cast %119 : vector<1x1x64xf32> to vector<1x64xf32>
    %121 = vector.broadcast %120 : vector<1x64xf32> to vector<8x64xf32>
    %122 = arith.addf %118, %121 : vector<8x64xf32>
    %cst_54 = arith.constant 5.000000e-01 : f32
    %123 = vector.broadcast %cst_54 : f32 to vector<8x64xf32>
    %124 = arith.mulf %123, %122 : vector<8x64xf32>
    %cst_55 = arith.constant 4.471500e-02 : f32
    %125 = vector.broadcast %cst_55 : f32 to vector<8x64xf32>
    %126 = arith.mulf %125, %122 : vector<8x64xf32>
    %127 = arith.mulf %126, %122 : vector<8x64xf32>
    %128 = arith.mulf %127, %122 : vector<8x64xf32>
    %129 = arith.addf %122, %128 : vector<8x64xf32>
    %cst_56 = arith.constant 0.797884583 : f32
    %130 = vector.broadcast %cst_56 : f32 to vector<8x64xf32>
    %131 = arith.mulf %130, %129 : vector<8x64xf32>
    %132 = math.tanh %131 : vector<8x64xf32>
    %cst_57 = arith.constant 1.000000e+00 : f32
    %133 = vector.broadcast %cst_57 : f32 to vector<8x64xf32>
    %134 = arith.addf %133, %132 : vector<8x64xf32>
    %135 = arith.mulf %124, %134 : vector<8x64xf32>
    %c0_58 = arith.constant 0 : index
    %c0_59 = arith.constant 0 : index
    %c0_60 = arith.constant 0 : index
    %136 = vector.load %arg13[%c0_58, %c0_59, %c0_60] : memref<1x64x16xf32, #tpu.memory_space<vmem>>, vector<1x64x16xf32>
    %137 = vector.shape_cast %136 : vector<1x64x16xf32> to vector<64x16xf32>
    %cst_61 = arith.constant dense<0.000000e+00> : vector<8x16xf32>
    %138 = tpu.matmul %135, %137, %cst_61 {dimension_numbers = #tpu.dot_dimension_numbers<[1], [0], [0], [1], [0, 0, 1, 1], [], []>} : vector<8x64xf32>, vector<64x16xf32>, vector<8x16xf32> -> vector<8x16xf32>
    %c0_62 = arith.constant 0 : index
    %c0_63 = arith.constant 0 : index
    %c0_64 = arith.constant 0 : index
    %139 = vector.load %arg14[%c0_62, %c0_63, %c0_64] : memref<1x1x16xf32, #tpu.memory_space<vmem>>, vector<1x1x16xf32>
    %140 = vector.shape_cast %139 : vector<1x1x16xf32> to vector<1x16xf32>
    %141 = vector.broadcast %140 : vector<1x16xf32> to vector<8x16xf32>
    %142 = arith.addf %138, %141 : vector<8x16xf32>
    %143 = arith.addf %91, %142 : vector<8x16xf32>
    %c0_65 = arith.constant 0 : index
    %c0_66 = arith.constant 0 : index
    %144 = vector.load %arg19[%c0_65, %c0_66] : memref<8x16xf32, #tpu.memory_space<vmem>>, vector<8x16xf32>
    tpu.vector_store %arg19[%c0_65, %c0_66], %143 {strides = array<i32>} : memref<8x16xf32, #tpu.memory_space<vmem>>, vector<8x16xf32>,
    %c1_i32 = arith.constant 1 : i32
    %145 = arith.cmpi eq, %arg1, %c1_i32 : i32
    %146 = arith.extui %145 : i1 to i32
    %c0_i32_67 = arith.constant 0 : i32
    %147 = arith.cmpi ne, %146, %c0_i32_67 : i32
    scf.if %147 {
      %c0_68 = arith.constant 0 : index
      %c0_69 = arith.constant 0 : index
      %148 = vector.load %arg15[%c0_68, %c0_69] : memref<1x16xf32, #tpu.memory_space<vmem>>, vector<1x16xf32>
      %c0_70 = arith.constant 0 : index
      %c0_71 = arith.constant 0 : index
      %149 = vector.load %arg16[%c0_70, %c0_71] : memref<1x16xf32, #tpu.memory_space<vmem>>, vector<1x16xf32>
      %cst_72 = arith.constant dense<0.000000e+00> : vector<8xf32>
      %150 = vector.multi_reduction <add>, %143, %cst_72 [1] : vector<8x16xf32> to vector<8xf32>
      %151 = vector.shape_cast %150 : vector<8xf32> to vector<8x1xf32>
      %cst_73 = arith.constant 1.600000e+01 : f32
      %152 = vector.broadcast %cst_73 : f32 to vector<8x1xf32>
      %153 = arith.divf %151, %152 : vector<8x1xf32>
      %154 = vector.broadcast %153 : vector<8x1xf32> to vector<8x16xf32>
      %155 = arith.subf %143, %154 : vector<8x16xf32>
      %156 = arith.mulf %155, %155 : vector<8x16xf32>
      %cst_74 = arith.constant dense<0.000000e+00> : vector<8xf32>
      %157 = vector.multi_reduction <add>, %156, %cst_74 [1] : vector<8x16xf32> to vector<8xf32>
      %158 = vector.shape_cast %157 : vector<8xf32> to vector<8x1xf32>
      %cst_75 = arith.constant 1.600000e+01 : f32
      %159 = vector.broadcast %cst_75 : f32 to vector<8x1xf32>
      %160 = arith.divf %158, %159 : vector<8x1xf32>
      %cst_76 = arith.constant 9.99999974E-6 : f32
      %161 = vector.broadcast %cst_76 : f32 to vector<8x1xf32>
      %162 = arith.addf %160, %161 : vector<8x1xf32>
      %163 = math.rsqrt %162 : vector<8x1xf32>
      %164 = vector.broadcast %163 : vector<8x1xf32> to vector<8x16xf32>
      %165 = arith.mulf %155, %164 : vector<8x16xf32>
      %166 = vector.broadcast %148 : vector<1x16xf32> to vector<8x16xf32>
      %167 = arith.mulf %165, %166 : vector<8x16xf32>
      %168 = vector.broadcast %149 : vector<1x16xf32> to vector<8x16xf32>
      %169 = arith.addf %167, %168 : vector<8x16xf32>
      %c0_77 = arith.constant 0 : index
      %c0_78 = arith.constant 0 : index
      %170 = vector.load %arg17[%c0_77, %c0_78] : memref<16x128xf32, #tpu.memory_space<vmem>>, vector<16x128xf32>
      %cst_79 = arith.constant dense<0.000000e+00> : vector<8x128xf32>
      %171 = tpu.matmul %169, %170, %cst_79 {dimension_numbers = #tpu.dot_dimension_numbers<[1], [0], [0], [1], [0, 0, 1, 1], [], []>} : vector<8x16xf32>, vector<16x128xf32>, vector<8x128xf32> -> vector<8x128xf32>
      %c0_80 = arith.constant 0 : index
      %c0_81 = arith.constant 0 : index
      %172 = vector.load %arg18[%c0_80, %c0_81] : memref<8x128xf32, #tpu.memory_space<vmem>>, vector<8x128xf32>
      tpu.vector_store %arg18[%c0_80, %c0_81], %171 {strides = array<i32>} : memref<8x128xf32, #tpu.memory_space<vmem>>, vector<8x128xf32>,
    } else {
    }
    return
  }
  func.func @transform_0(%arg0: i32, %arg1: i32, %arg2: memref<2x8xi32, #tpu.memory_space<smem>>) -> (i32, i32, i32) {
    %c0_i32 = arith.constant 0 : i32
    %c0_i32_0 = arith.constant 0 : i32
    %c0_i32_1 = arith.constant 0 : i32
    %c0_i32_2 = arith.constant 0 : i32
    return %c0_i32, %c0_i32_0, %c0_i32_1 : i32, i32, i32
  }
  func.func @transform_1(%arg0: i32, %arg1: i32, %arg2: memref<2x8xi32, #tpu.memory_space<smem>>) -> (i32, i32) {
    %c0_i32 = arith.constant 0 : i32
    %c0_i32_0 = arith.constant 0 : i32
    %c0_i32_1 = arith.constant 0 : i32
    return %c0_i32, %c0_i32_0 : i32, i32
  }
  func.func @transform_2(%arg0: i32, %arg1: i32, %arg2: memref<2x8xi32, #tpu.memory_space<smem>>) -> (i32, i32, i32) {
    %c0_i32 = arith.constant 0 : i32
    %c0_i32_0 = arith.constant 0 : i32
    %c0_i32_1 = arith.constant 0 : i32
    return %arg1, %c0_i32, %c0_i32_0 : i32, i32, i32
  }
  func.func @transform_3(%arg0: i32, %arg1: i32, %arg2: memref<2x8xi32, #tpu.memory_space<smem>>) -> (i32, i32, i32) {
    %c0_i32 = arith.constant 0 : i32
    %c0_i32_0 = arith.constant 0 : i32
    %c0_i32_1 = arith.constant 0 : i32
    return %arg1, %c0_i32, %c0_i32_0 : i32, i32, i32
  }
  func.func @transform_4(%arg0: i32, %arg1: i32, %arg2: memref<2x8xi32, #tpu.memory_space<smem>>) -> (i32, i32, i32) {
    %c0_i32 = arith.constant 0 : i32
    %c0_i32_0 = arith.constant 0 : i32
    %c0_i32_1 = arith.constant 0 : i32
    return %arg1, %c0_i32, %c0_i32_0 : i32, i32, i32
  }
  func.func @transform_5(%arg0: i32, %arg1: i32, %arg2: memref<2x8xi32, #tpu.memory_space<smem>>) -> (i32, i32, i32) {
    %c0_i32 = arith.constant 0 : i32
    %c0_i32_0 = arith.constant 0 : i32
    %c0_i32_1 = arith.constant 0 : i32
    return %arg1, %c0_i32, %c0_i32_0 : i32, i32, i32
  }
  func.func @transform_6(%arg0: i32, %arg1: i32, %arg2: memref<2x8xi32, #tpu.memory_space<smem>>) -> (i32, i32, i32) {
    %c0_i32 = arith.constant 0 : i32
    %c0_i32_0 = arith.constant 0 : i32
    %c0_i32_1 = arith.constant 0 : i32
    return %arg1, %c0_i32, %c0_i32_0 : i32, i32, i32
  }
  func.func @transform_7(%arg0: i32, %arg1: i32, %arg2: memref<2x8xi32, #tpu.memory_space<smem>>) -> (i32, i32, i32) {
    %c0_i32 = arith.constant 0 : i32
    %c0_i32_0 = arith.constant 0 : i32
    %c0_i32_1 = arith.constant 0 : i32
    return %arg1, %c0_i32, %c0_i32_0 : i32, i32, i32
  }
  func.func @transform_8(%arg0: i32, %arg1: i32, %arg2: memref<2x8xi32, #tpu.memory_space<smem>>) -> (i32, i32, i32) {
    %c0_i32 = arith.constant 0 : i32
    %c0_i32_0 = arith.constant 0 : i32
    %c0_i32_1 = arith.constant 0 : i32
    return %arg1, %c0_i32, %c0_i32_0 : i32, i32, i32
  }
  func.func @transform_9(%arg0: i32, %arg1: i32, %arg2: memref<2x8xi32, #tpu.memory_space<smem>>) -> (i32, i32, i32) {
    %c0_i32 = arith.constant 0 : i32
    %c0_i32_0 = arith.constant 0 : i32
    %c0_i32_1 = arith.constant 0 : i32
    return %arg1, %c0_i32, %c0_i32_0 : i32, i32, i32
  }
  func.func @transform_10(%arg0: i32, %arg1: i32, %arg2: memref<2x8xi32, #tpu.memory_space<smem>>) -> (i32, i32, i32) {
    %c0_i32 = arith.constant 0 : i32
    %c0_i32_0 = arith.constant 0 : i32
    %c0_i32_1 = arith.constant 0 : i32
    return %arg1, %c0_i32, %c0_i32_0 : i32, i32, i32
  }
  func.func @transform_11(%arg0: i32, %arg1: i32, %arg2: memref<2x8xi32, #tpu.memory_space<smem>>) -> (i32, i32, i32) {
    %c0_i32 = arith.constant 0 : i32
    %c0_i32_0 = arith.constant 0 : i32
    %c0_i32_1 = arith.constant 0 : i32
    return %arg1, %c0_i32, %c0_i32_0 : i32, i32, i32
  }
  func.func @transform_12(%arg0: i32, %arg1: i32, %arg2: memref<2x8xi32, #tpu.memory_space<smem>>) -> (i32, i32) {
    %c0_i32 = arith.constant 0 : i32
    %c0_i32_0 = arith.constant 0 : i32
    %c0_i32_1 = arith.constant 0 : i32
    return %c0_i32, %c0_i32_0 : i32, i32
  }
  func.func @transform_13(%arg0: i32, %arg1: i32, %arg2: memref<2x8xi32, #tpu.memory_space<smem>>) -> (i32, i32) {
    %c0_i32 = arith.constant 0 : i32
    %c0_i32_0 = arith.constant 0 : i32
    %c0_i32_1 = arith.constant 0 : i32
    return %c0_i32, %c0_i32_0 : i32, i32
  }
  func.func @transform_14(%arg0: i32, %arg1: i32, %arg2: memref<2x8xi32, #tpu.memory_space<smem>>) -> (i32, i32) {
    %c0_i32 = arith.constant 0 : i32
    %c0_i32_0 = arith.constant 0 : i32
    %c0_i32_1 = arith.constant 0 : i32
    return %c0_i32, %c0_i32_0 : i32, i32
  }
  func.func @transform_15(%arg0: i32, %arg1: i32, %arg2: memref<2x8xi32, #tpu.memory_space<smem>>) -> (i32, i32) {
    %c0_i32 = arith.constant 0 : i32
    %c0_i32_0 = arith.constant 0 : i32
    return %arg0, %c0_i32 : i32, i32
  }
}

</mosaic_0001>

<bundles_post_ra>
// kernel: tpu_custom_call.1
= control target key start
LH: loop header
LB: loop body
LE: loop exit
PB: predicated region body
PF: predicated region fallthrough
CT: control target
= control target key end

     0   :  { %s3015_s0 = inlined_call_operand.vmem [shape: s32[2,8], index: 0, kind: input, shape index: {}]   ;;  %s3016_s1 = inlined_call_operand.vmem [shape: f32[8,1,16], index: 1, kind: input, shape index: {}]   ;;  %s3017_s2 = inlined_call_operand.vmem [shape: f32[8,16], index: 2, kind: input, shape index: {}]   ;;  %s3018_s3 = inlined_call_operand.vmem [shape: f32[2,1,16], index: 3, kind: input, shape index: {}]   ;;  %s3019_s4 = inlined_call_operand.vmem [shape: f32[2,1,16], index: 4, kind: input, shape index: {}]   ;;  %s3020_s5 = inlined_call_operand.vmem [shape: f32[2,16,48], index: 5, kind: input, shape index: {}]   ;;  %s3021_s6 = inlined_call_operand.vmem [shape: f32[2,16,16], index: 6, kind: input, shape index: {}]   ;;  %s3022_s7 = inlined_call_operand.vmem [shape: f32[2,1,16], index: 7, kind: input, shape index: {}]   ;;  %s3023_s8 = inlined_call_operand.vmem [shape: f32[2,1,16], index: 8, kind: input, shape index: {}]   ;;  %s3024_s9 = inlined_call_operand.vmem [shape: f32[2,16,64], index: 9, kind: input, shape index: {}]   ;;  %s3025_s10 = inlined_call_operand.vmem [shape: f32[2,1,64], index: 10, kind: input, shape index: {}]   ;;  %s3026_s11 = inlined_call_operand.vmem [shape: f32[2,64,16], index: 11, kind: input, shape index: {}]   ;;  %s3027_s12 = inlined_call_operand.vmem [shape: f32[2,1,16], index: 12, kind: input, shape index: {}]   ;;  %s3028_s13 = inlined_call_operand.vmem [shape: f32[1,16], index: 13, kind: input, shape index: {}]   ;;  %s3029_s14 = inlined_call_operand.vmem [shape: f32[1,16], index: 14, kind: input, shape index: {}]   ;;  %s3030_s15 = inlined_call_operand.vmem [shape: f32[16,128], index: 15, kind: input, shape index: {}]   ;;  %s3031_s16 = inlined_call_operand.hbm [shape: f32[16,128], index: 16, kind: output, shape index: {}]  }
   0x1   :  { %3050 = sst [smem:[#allocation23_spill]] %s3015_s0 }
   0x2   :  { %3051 = sst [smem:[#allocation24_spill]] %s3016_s1  ;;  %s3062_s23 = sld [smem:[#allocation23_spill]] }
   0x3   :  { %3052 = sst [smem:[#allocation25_spill]] %s3020_s5 }
   0x4   :  { %3053 = sst [smem:[#allocation26_spill]] %s3021_s6 }
   0x5   :  { %3054 = sst [smem:[#allocation27_spill]] %s3024_s9 }
   0x6   :  { %3055 = sst [smem:[#allocation28_spill]] %s3025_s10 }
   0x7   :  { %3056 = sst [smem:[#allocation29_spill]] %s3026_s11 }
   0x8   :  { %3057 = sst [smem:[#allocation30_spill]] %s3027_s12  ;;  %s21_s1 = sshll.u32 %s3062_s23, 4  ;;  %s22_s1 = int_to_ptr.vmem [resolvable:$true] %s21_s1 }
   0x9   :  { %3058 = sst [smem:[#allocation31_spill]] %s3028_s13  ;;  %s2393_s24 = scalar_lea.vmem %s22_s1, 32 }
   0xa   :  { %3059 = sst [smem:[#allocation32_spill]] %s3029_s14  ;;  %p2394_p0 = scmp.ne.s32.totalorder %s22_s1, %s2393_s24 }
   0xb   :  { %3060 = sst [smem:[#allocation33_spill]] %s3030_s15  ;;  %p2398_p1 = scmp.lt.s32.totalorder %s22_s1, %s22_s1 }
   0xc   :  { %3061 = sst [smem:[#allocation34_spill]] %s3031_s16  ;;  %p2399_p2 = scmp.lt.s32.totalorder %s2393_s24, %s2393_s24 }
   0xe   :  { %p2400_p3 = por %p2399_p2, %p2398_p1 }
  0x10   :  { %p2401_p4 = pnand %p2400_p3, %p2394_p0 }
  0x12   :  { %2404 = shalt.err (!%p2401_p4)  }
  0x13   :  { %s2503_s25 = smov [#allocation4]  }
  0x14   :  { %24 = dma.vmem_to_smem %s22_s1, 32, %s2503_s25, [#allocation3] }
  0x15   :  { %2465 = dma.done.wait [#allocation3], 32 }
  0x16   :  { %2466 = vsyncadd [#allocation3], 4294967264 }
  0x17   :  { %26 = sfence }
  0x18   :  { %27 = vsyncpa [#allocation6], 0 }
  0x19   :  { %29 = vsyncpa [#allocation6 + $0x1], 0  ;;  %s2613_s26 = smov 0   ;;  %s2615_s27 = smov 0  }
  0x1a   :  { %s2617_s28 = smov 0   ;;  %s2619_s29 = smov 0  }
  0x1b   :  { %s2621_s30 = smov 0   ;;  %s2623_s0 = smov 0  }
  0x1c   :  { %s2625_s17 = smov 0   ;;  %s2627_s1 = smov 0  }
  0x1d LB: > { %3063 = sst [smem:[#allocation9_spill]] %s2473_s26  ;;  %s2079_s18 = sadd.s32 4294967295, %s2501_s1   ;;  %s2501_s1 = sphi %s2627_s1, %s35_s1   ;;  %s2497_s17 = sphi %s2625_s17, %s3117_s17   ;;  %s2493_s0 = sphi %s2623_s0, %s3116_s0   ;;  %s2489_s30 = sphi %s2621_s30, %s3115_s30   ;;  %s2485_s29 = sphi %s2619_s29, %s3114_s29   ;;  %s2481_s28 = sphi %s2617_s28, %s3113_s28   ;;  %s2477_s27 = sphi %s2615_s27, %s3112_s27   ;;  %s2473_s26 = sphi %s2613_s26, %s3111_s26  }
  0x1e   : > { %3064 = sst [smem:[#allocation10_spill]] %s2477_s27  ;;  %s2080_s19 = sadd.s32 4294967294, %s2501_s1  }
  0x1f   : > { %3065 = sst [smem:[#allocation11_spill]] %s2481_s28  ;;  %s44_s20 = sadd.s32 1, %s2493_s0 }
  0x20   : > { %3066 = sst [smem:[#allocation12_spill]] %s2485_s29  ;;  %p45_p5 = scmp.ge.s32.totalorder %s44_s20, 2 }
  0x21   : > { %3067 = sst [smem:[#allocation13_spill]] %s2489_s30  ;;  %s47_s21 = sadd.s32 1, %s2497_s17 }
  0x22   : > { %3068 = sst [smem:[#allocation14_spill]] %s2493_s0  ;;  %p429_p6 = scmp.ne.s32.totalorder %s2481_s28, %s2477_s27 }
  0x23   : > { %3069 = sst [smem:[#allocation15_spill]] %s2497_s17  ;;  %p430_p7 = scmp.eq.s32.totalorder %s2079_s18, 3 }
  0x24   : > { %3070 = sst [smem:[#allocation16_spill]] %s2501_s1  ;;  %s3119_s20 = smov (%p45_p5, %s44_s20), 0 }
  0x25   : > { %3071 = sst [smem:[#allocation17_spill]] %s3119_s20  ;;  %s3121_s21 = smov (!%p45_p5, %s47_s21), %s2497_s17 }
  0x26   : > { %p2662_p8 = por %p430_p7, %p429_p6  ;;  %p435_p9 = scmp.ne.s32.totalorder %s2477_s27, %s2473_s26 }
  0x27   : > { %p49_p10 = scmp.ge.s32.totalorder %s3121_s21, 2  ;;  %p436_p11 = scmp.eq.s32.totalorder %s2080_s19, 3 }
  0x28   : > { %s3072_s22 = scalar_select %p2662_p8, 1, 0 }
  0x29   : > { %p2083_p12 = scmp.ge.s32.totalorder %s2501_s1, 1  ;;  %p537_p13 = scmp.lt.s32.totalorder %s2501_s1, 5 }
  0x2a   : > { %3073 = sst [smem:[#allocation18_spill]] %s3072_s22  ;;  %s3123_s21 = smov (%p49_p10, %s3121_s21), 0 }
  0x2b   : > { %3074 = sst [smem:[#allocation19_spill]] %s3123_s21  ;;  %p2672_p0 = por %p436_p11, %p435_p9 }
  0x2c   : > { %p538_p1 = pnand %p2083_p12, %p537_p13  ;;  %s416_s24 = ssub.s32 %s2497_s17, %s3123_s21 }
  0x2d   : > { %s3075_s23 = scalar_select %p2672_p0, 1, 0 }
  0x2e   : > { %s419_s25 = sadd.s32 1, %s2481_s28  ;;  %p417_p2 = scmp.eq.s32.totalorder %s416_s24, 0 }
  0x2f   : > { %3076 = sst [smem:[#allocation20_spill]] %s3075_s23  ;;  %541 = sbr.rel (%p538_p1) target bundleno = 3145 (0xc49), region = 80 }
  0x30   : > { %s2680_s18 = scalar_select %p417_p2, %s2481_s28, %s419_s25  }
  0x32   : > { %3077 = sst [smem:[#allocation21_spill]] %s2680_s18 }
  0x36   : > { %s3037_s19 = sand.u32 1, %s2477_s27   ;;  %p618_p3 = scmp.lt.s32.totalorder %s2485_s29, 1 }
  0x37   : > { %s2686_s20 = sshll.u32 %s3037_s19, 3  ;;  %s3079_s5 = sld [smem:[#allocation25_spill]] }
  0x38   : > { %3078 = sst [smem:[#allocation22_spill]] %s2686_s20  ;;  %s3080_s6 = sld [smem:[#allocation26_spill]] }
  0x39   : > { %s2689_s0 = scalar_select %p618_p3, %s2485_s29, 1 }
  0x3a   : > { %s3081_s9 = sld [smem:[#allocation27_spill]]  ;;  %s3083_s11 = sld [smem:[#allocation29_spill]] }
  0x3b   : > { %s2125_s18 = sshll.u32 %s2689_s0, 4  ;;  %s2128_s22 = sshll.u32 %s2689_s0, 6 }
  0x3c   : > { %p2093_p4 = scmp.ne.s32.totalorder %s2485_s29, 0 }
  0x3d   : > { %s2707_s21 = scalar_lea.vmem %s3079_s5, %s2125_s18  ;;  %v664_v0 = vld [vmem:[%s3017_s2] sm:$0x1] (!%p2093_p4)  ;;  %s3085_s20 = sld [smem:[#allocation24_spill]] (!%p2093_p4)  ;;  %v672_v1 = vld [vmem:[%s3017_s2 + $0x1] sm:$0x1] (!%p2093_p4)  ;;  %vm666_vm0 = vcmask (!%p2093_p4), 122880  }
  0x3e   : > { %s2712_s14 = scalar_lea.vmem %s3080_s6, %s2125_s18  ;;  %659 = sbr.rel (%p2093_p4) target bundleno = 85 (0x55), region = 84  ;;  %v679_v3 = vld [vmem:[%s3017_s2 + $0x2] sm:$0x1] (!%p2093_p4)  ;;  %v686_v6 = vld [vmem:[%s3017_s2 + $0x3] sm:$0x1] (!%p2093_p4) }
  0x3f   : > { %v693_v9 = vld [vmem:[%s3017_s2 + $0x4] sm:$0x1] (!%p2093_p4)  ;;  %v700_v12 = vld [vmem:[%s3017_s2 + $0x5] sm:$0x1] (!%p2093_p4)  ;;  %v707_v15 = vld [vmem:[%s3017_s2 + $0x6] sm:$0x1] (!%p2093_p4) }
  0x40   : > { %s2721_s15 = scalar_lea.vmem %s3081_s9, %s2125_s18  ;;  %s2731_s27 = scalar_lea.vmem %s3083_s11, %s2128_s22  ;;  %v714_v20 = vld [vmem:[%s3017_s2 + $0x7] sm:$0x1] (!%p2093_p4) }
  0x41   : > { %s2094_s18 = sshll.u32 (!%p2093_p4), %s2489_s30, 7 }
  0x42   : > { %s661_s19 = sld [smem:[#allocation4 + %s2094_s18]] (!%p2093_p4)  ;;  %s668_s25 = sadd.s32 (!%p2093_p4), 1, %s2094_s18 }
  0x43   : > { %s669_s26 = sld [smem:[#allocation4 + %s668_s25]] (!%p2093_p4)  ;;  %s675_s28 = sadd.s32 (!%p2093_p4), 2, %s2094_s18 }
  0x44   : > { %s676_s16 = sld [smem:[#allocation4 + %s675_s28]] (!%p2093_p4)  ;;  %s682_s17 = sadd.s32 (!%p2093_p4), 3, %s2094_s18 }
  0x45   : > { %s683_s9 = sld [smem:[#allocation4 + %s682_s17]]  ;;  %s689_s5 = sadd.s32 4, %s2094_s18 }
  0x46   : > { %s2740_s1 = sld [smem:[#allocation4 + %s689_s5]]  ;;  %s696_s22 = sadd.s32 5, %s2094_s18 }
  0x47   : > { %s2745_s23 = sld [smem:[#allocation4 + %s696_s22]]  ;;  %s703_s24 = sadd.s32 6, %s2094_s18 }
  0x48   : > { %s662_s29 = scalar_lea.vmem %s3085_s20, %s661_s19  ;;  %s2753_s17 = sld [smem:[#allocation4 + %s703_s24]] }
  0x49   : > { %v663_v2 = vld [vmem:[%s662_s29] sm:$0x1]  ;;  %s670_s11 = scalar_lea.vmem %s3085_s20, %s669_s26  ;;  %s710_s10 = sadd.s32 7, %s2094_s18 }
  0x4a   : > { %v665_v4 = vadd.f32 %v664_v0, %v663_v2  ;;  %v671_v5 = vld [vmem:[%s670_s11] sm:$0x1]  ;;  %s677_s12 = scalar_lea.vmem %s3085_s20, %s676_s16  ;;  %s711_s19 = sld [smem:[#allocation4 + %s710_s10]] }
  0x4b   : > { %v673_v7 = vadd.f32 %v672_v1, %v671_v5  ;;  %v678_v8 = vld [vmem:[%s677_s12] sm:$0x1]  ;;  %s684_s28 = scalar_lea.vmem %s3085_s20, %s683_s9 }
  0x4c   : > { %667 = vst.msk [vmem:[#allocation2] sm:$0x1] %vm666_vm0, %v665_v4  ;;  %v680_v10 = vadd.f32 %v679_v3, %v678_v8  ;;  %v685_v11 = vld [vmem:[%s684_s28] sm:$0x1]  ;;  %s691_s22 = scalar_lea.vmem %s3085_s20, %s2740_s1 }
  0x4d   : > { %674 = vst.msk [vmem:[#allocation2 + $0x1] sm:$0x1] %vm666_vm0, %v673_v7  ;;  %v687_v13 = vadd.f32 %v686_v6, %v685_v11  ;;  %v692_v14 = vld [vmem:[%s691_s22] sm:$0x1]  ;;  %s698_s13 = scalar_lea.vmem %s3085_s20, %s2745_s23 }
  0x4e   : > { %681 = vst.msk [vmem:[#allocation2 + $0x2] sm:$0x1] %vm666_vm0, %v680_v10  ;;  %v694_v16 = vadd.f32 %v693_v9, %v692_v14  ;;  %v699_v17 = vld [vmem:[%s698_s13] sm:$0x1]  ;;  %s705_s26 = scalar_lea.vmem %s3085_s20, %s2753_s17 }
  0x4f   : > { %688 = vst.msk [vmem:[#allocation2 + $0x3] sm:$0x1] %vm666_vm0, %v687_v13  ;;  %v701_v18 = vadd.f32 %v700_v12, %v699_v17  ;;  %v706_v19 = vld [vmem:[%s705_s26] sm:$0x1] }
  0x50   : > { %695 = vst.msk [vmem:[#allocation2 + $0x4] sm:$0x1] %vm666_vm0, %v694_v16  ;;  %v708_v21 = vadd.f32 %v707_v15, %v706_v19  ;;  %s712_s5 = scalar_lea.vmem %s3085_s20, %s711_s19 }
  0x51   : > { %702 = vst.msk [vmem:[#allocation2 + $0x5] sm:$0x1] %vm666_vm0, %v701_v18  ;;  %v713_v22 = vld [vmem:[%s712_s5] sm:$0x1] }
  0x52   : > { %709 = vst.msk [vmem:[#allocation2 + $0x6] sm:$0x1] %vm666_vm0, %v708_v21  ;;  %v715_v23 = vadd.f32 %v714_v20, %v713_v22 }
  0x54   : > { %716 = vst.msk [vmem:[#allocation2 + $0x7] sm:$0x1] %vm666_vm0, %v715_v23 }
  0x55 PF: > { %vm720_vm1 = vcmask 130048   ;;  %v749_v31 = vld [vmem:[%s2707_s21] sm:$0xff]  ;;  %v750_v32 = vld [vmem:[%s2707_s21 + $0x8] sm:$0xff]  ;;  %v2504_v33 = vmov 0.0|0.0   ;;  %vm2505_vm2 = vmmov 0   ;;  %v2506_v35 = vmov 0.0   ;;  %s3086_s19 = scalar_lea.vmem %s3018_s3, %s2689_s0  ;;  %s3087_s22 = scalar_lea.vmem %s3019_s4, %s2689_s0 }
  0x56   : > { %2253 = vmatprep.subr.bf16.mxu0 %v2504_v33  ;;  %v2254_v34 = vpack.c.bf16 %v750_v32, %v749_v31  ;;  %2170 = vmatprep.mubr.msk.f32.mxu0 %vm2505_vm2, %v2506_v35  ;;  %v2095_v40 = vld [vmem:[%s3086_s19] ss:$0 sm:$0xff]  ;;  %s2507_s10 = smov 124   ;;  %s2508_s6 = smov 112   ;;  %vm827_vm3 = vcmask 31744   ;;  %vm902_vm4 = vcmask 64512  }
  0x57   : > { %2183 = vmatprep.subr.mxu1 %v2506_v35  ;;  %2185 = vmatprep.mubr.msk.f32.mxu1 %vm2505_vm2, %v2506_v35  ;;  %v2096_v42 = vld [vmem:[%s3087_s22] ss:$0 sm:$0xff]  ;;  %s2509_s9 = smov 108   ;;  %s2510_s30 = smov 104   ;;  %vm1499_vm5 = vcmask 97280   ;;  %vm1712_vm6 = vcmask 523264  }
  0x58   : > { %2255 = vmatpush3.bf16.msra.mxu0 %v2254_v34  ;;  %s2511_s13 = smov 120   ;;  %s2512_s12 = smov 100  }
  0x59   : > { %2173 = vmatprep.subr.mxu0 %v2506_v35  ;;  %s2513_s24 = smov 116   ;;  %s2514_s1 = smov 96  }
  0x5a   : > { %s2515_s29 = smov 88   ;;  %s2516_s26 = smov 84  }
  0x5b   : > { %v2805_v24 = vld [vmem:[#allocation2] sm:$0xff]  ;;  %s2517_s25 = smov 92   ;;  %s2518_s28 = smov 4  }
  0x5c   : > { %v721_v25 = vsel %vm720_vm1, %v2805_v24, 0.0  ;;  %s2519_s23 = smov 8   ;;  %s2520_s18 = smov 12  }
  0x5d   : > { %722 = vadd.xlane.f32.xlu0 %v721_v25  ;;  %s3088_s21 = scalar_lea.vmem %s3022_s7, %s2689_s0  ;;  %s3090_s22 = sld [smem:[#allocation28_spill]] }
  0xea   : > { %v723_v26 = vpop.xlane.xlu0 %722 }
  0xeb   : > { %v725_v27 = vmul.f32 0.0625, %v723_v26 }
  0xed   : > { %v726_v28 = vsub.f32 %v2805_v24, %v725_v27 }
  0xef   : > { %v727_v29 = vmul.f32 %v726_v28, %v726_v28 }
  0xf1   : > { %v728_v30 = vsel %vm720_vm1, %v727_v29, 0.0 }
  0xf2   : > { %729 = vadd.xlane.f32.xlu0 %v728_v30 }
 0x17f   : > { %v730_v36 = vpop.xlane.xlu0 %729 }
 0x180   : > { %v731_v37 = vmul.f32 0.0625, %v730_v36 }
 0x182   : > { %v732_v38 = vadd.f32 1e-05, %v731_v37 }
 0x184   : > { %2369 = vrsqrt.f32 %v732_v38 }
 0x18e   : > { %v2370_v39 = vpop.eup %2369 }
 0x18f   : > { %v734_v41 = vmul.f32 %v2370_v39, %v726_v28 }
 0x191   : > { %v741_v43 = vmul.f32 %v2095_v40, %v734_v41 }
 0x193   : > { %v748_v44 = vadd.f32 %v2096_v42, %v741_v43  ;;  %v1501_v43 = vld [vmem:[%s2712_s14] sm:$0xff] }
 0x195   : > { %2171 = vmatmul.mubr.msk.f32.vlgmr.msra.gmra.mrb[0].mxu0 %vm720_vm1, %v748_v44  ;;  %v1502_v44 = vld [vmem:[%s2712_s14 + $0x8] sm:$0xff] }
 0x196   : > { %2175 = vmatprep.mubr.msk.f32.mxu0 %vm2505_vm2, %v2506_v35 }
 0x268   : > { %v2833_v45 = vpop.f32.mrb[0].mxu0 }
 0x269   : > { %990 = vrot.lane.b32.xlu0 %v2833_v45, %s2507_s10  ;;  %825 = vrot.lane.b32.xlu1 %v2833_v45, %s2508_s6  ;;  %v2172_v46 = vpop.f32.mrb[1].mxu0  ;;  %s3091_s10 = scalar_lea.vmem %s3090_s22, %s2689_s0 }
 0x26d   : > { %992 = vrot.lane.b32.xlu1 %v2833_v45, %s2509_s9  ;;  %s3092_s9 = sld [smem:[#allocation30_spill]] }
 0x271   : > { %1157 = vrot.lane.b32.xlu1 %v2833_v45, %s2510_s30 }
 0x273   : > { %s3093_s30 = scalar_lea.vmem %s3092_s9, %s2689_s0 }
 0x275   : > { %1155 = vrot.lane.b32.xlu1 %v2833_v45, %s2511_s13  ;;  %s3094_s13 = sld [smem:[#allocation12_spill]] }
 0x279   : > { %1322 = vrot.lane.b32.xlu1 %v2833_v45, %s2512_s12 }
 0x27b   : > { %p2117_p5 = scmp.ne.s32.totalorder %s3094_s13, 1 }
 0x27c   : > { %vm2522_vm7 = vmmov (!%p2117_p5), 0   ;;  %s3098_s5 = sld [smem:[#allocation32_spill]] (!%p2117_p5) }
 0x27d   : > { %1320 = vrot.lane.b32.xlu1 %v2833_v45, %s2513_s24  ;;  %s3095_s24 = sld [smem:[#allocation33_spill]] (!%p2117_p5) }
 0x2db   : > { %v826_v47 = vpop.permute.xlu1 %825  ;;  %v991_v49 = vpop.permute.xlu0 %990 }
 0x2dc   : > { %2174 = vmatpush3.xpose.msk.msra.mxu0 %vm827_vm3, %v826_v47 }
 0x2dd   : > { %2178 = vmatprep.subr.mxu0 %v2506_v35 }
 0x2df   : > { %2176 = vmatmul.mubr.msk.f32.vlgmr.msra.gmra.mrb[2].mxu0 %vm827_vm3, %v2833_v45  ;;  %v993_v48 = vpop.permute.xlu1 %992 }
 0x2e0   : > { %2184 = vmatpush3.xpose.msk.msra.mxu1 %vm827_vm3, %v993_v48  ;;  %2180 = vmatprep.mubr.msk.f32.mxu0 %vm2505_vm2, %v2506_v35 }
 0x2e1   : > { %2193 = vmatprep.subr.mxu1 %v2506_v35 }
 0x2e3   : > { %2186 = vmatmul.mubr.msk.f32.vlgmr.msra.gmra.mrb[0].mxu1 %vm827_vm3, %v991_v49  ;;  %v1158_v50 = vpop.permute.xlu1 %1157 }
 0x2e4   : > { %2194 = vmatpush3.xpose.msk.msra.mxu1 %vm827_vm3, %v1158_v50  ;;  %2195 = vmatprep.mubr.msk.f32.mxu1 %vm2505_vm2, %v2506_v35 }
 0x2e5   : > { %2203 = vmatprep.subr.mxu1 %v2506_v35 }
 0x2e7   : > { %v1156_v51 = vpop.permute.xlu1 %1155 }
 0x2e8   : > { %2196 = vmatmul.mubr.msk.f32.vlgmr.msra.gmra.mrb[2].mxu1 %vm827_vm3, %v1156_v51 }
 0x2e9   : > { %2205 = vmatprep.mubr.msk.f32.mxu1 %vm2505_vm2, %v2506_v35 }
 0x2eb   : > { %v1323_v52 = vpop.permute.xlu1 %1322 }
 0x2ec   : > { %2204 = vmatpush3.xpose.msk.msra.mxu1 %vm827_vm3, %v1323_v52 }
 0x2ed   : > { %2256 = vmatprep.subr.bf16.mxu1 %v2504_v33 }
 0x2ef   : > { %v1321_v53 = vpop.permute.xlu1 %1320 }
 0x2f0   : > { %2206 = vmatmul.mubr.msk.f32.vlgmr.msra.gmra.mrb[4].mxu1 %vm827_vm3, %v1321_v53 }
 0x2f1   : > { %2217 = vmatprep.mubr.msk.f32.mxu1 %vm2505_vm2, %v2506_v35 }
 0x3b2   : > { %v898_v54 = vpop.f32.mrb[2].mxu0 }
 0x3b3   : > { %v2177_v55 = vpop.f32.mrb[3].mxu0  ;;  %v903_v56 = vsel %vm902_vm4, %v898_v54, -inf }
 0x3b4   : > { %904 = vmax.xlane.f32.xlu1 %v903_v56 }
 0x3b6   : > { %v1064_v57 = vpop.f32.mrb[0].mxu1 }
 0x3b7   : > { %v2187_v58 = vpop.f32.mrb[1].mxu1  ;;  %v1068_v59 = vsel %vm902_vm4, %v1064_v57, -inf }
 0x3b8   : > { %1069 = vmax.xlane.f32.xlu0 %v1068_v59 }
 0x3bb   : > { %v1229_v60 = vpop.f32.mrb[2].mxu1 }
 0x3bc   : > { %v2197_v61 = vpop.f32.mrb[3].mxu1  ;;  %v1233_v62 = vsel %vm902_vm4, %v1229_v60, -inf }
 0x3bd   : > { %1234 = vmax.xlane.f32.xlu1 %v1233_v62 }
 0x3c3   : > { %v1394_v63 = vpop.f32.mrb[4].mxu1 }
 0x3c4   : > { %v2207_v0 = vpop.f32.mrb[5].mxu1  ;;  %v1398_v1 = vsel %vm902_vm4, %v1394_v63, -inf }
 0x3c5   : > { %1399 = vmax.xlane.f32.xlu0 %v1398_v1 }
 0x3ce   : > { %914 = vrot.lane.b32.xlu1 %v2833_v45, %s2514_s1 }
 0x441   : > { %v905_v2 = vpop.xlane.xlu1 %904 }
 0x442   : > { %v906_v3 = vsub.f32 %v898_v54, %v905_v2 }
 0x444   : > { %v907_v4 = vmul.f32 1.442695, %v906_v3 }
 0x445   : > { %v1070_v5 = vpop.xlane.xlu0 %1069 }
 0x446   : > { %2371 = vpow2.f32 %v907_v4  ;;  %v1071_v6 = vsub.f32 %v1064_v57, %v1070_v5 }
 0x448   : > { %v1072_v7 = vmul.f32 1.442695, %v1071_v6 }
 0x44a   : > { %2373 = vpow2.f32 %v1072_v7  ;;  %v1235_v8 = vpop.xlane.xlu1 %1234 }
 0x44b   : > { %v1236_v9 = vsub.f32 %v1229_v60, %v1235_v8  ;;  %v2111_v8 = vld [vmem:[%s3088_s21] ss:$0 sm:$0xff] }
 0x44d   : > { %v1237_v10 = vmul.f32 1.442695, %v1236_v9 }
 0x44e   : > { %v915_v11 = vpop.permute.xlu1 %914 }
 0x44f   : > { %2375 = vpow2.f32 %v1237_v10  ;;  %2179 = vmatpush3.msra.mxu0 %v915_v11 }
 0x450   : > { %v2372_v12 = vpop.eup %2371  ;;  %2188 = vmatprep.subr.mxu0 %v2506_v35 }
 0x451   : > { %v909_v13 = vsel %vm902_vm4, %v2372_v12, 0.0 }
 0x452   : > { %v1400_v14 = vpop.xlane.xlu0 %1399  ;;  %910 = vadd.xlane.f32.xlu1 %v909_v13  ;;  %v1697_v13 = vld [vmem:[%s2731_s27] sm:$0xff] }
 0x453   : > { %v1401_v15 = vsub.f32 %v1394_v63, %v1400_v14  ;;  %v1698_v14 = vld [vmem:[%s2731_s27 + $0x8] sm:$0xff] }
 0x454   : > { %v2374_v16 = vpop.eup %2373 }
 0x455   : > { %v1402_v17 = vmul.f32 1.442695, %v1401_v15  ;;  %v1074_v18 = vsel %vm902_vm4, %v2374_v16, 0.0  ;;  %v2263_v15 = vpack.c.bf16 %v1698_v14, %v1697_v13 }
 0x456   : > { %1075 = vadd.xlane.f32.xlu0 %v1074_v18 }
 0x457   : > { %2377 = vpow2.f32 %v1402_v17  ;;  %v1700_v17 = vld [vmem:[%s2731_s27 + $0x18] sm:$0xff] }
 0x459   : > { %v2376_v19 = vpop.eup %2375 }
 0x45a   : > { %v1239_v20 = vsel %vm902_vm4, %v2376_v19, 0.0 }
 0x45b   : > { %1240 = vadd.xlane.f32.xlu1 %v1239_v20  ;;  %v1702_v20 = vld [vmem:[%s2731_s27 + $0x28] sm:$0xff] }
 0x461   : > { %v2378_v21 = vpop.eup %2377 }
 0x462   : > { %v1404_v22 = vsel %vm902_vm4, %v2378_v21, 0.0 }
 0x463   : > { %1405 = vadd.xlane.f32.xlu0 %v1404_v22  ;;  %v1703_v22 = vld [vmem:[%s2731_s27 + $0x30] sm:$0xff] }
 0x46c   : > { %1244 = vrot.lane.b32.xlu1 %v2833_v45, %s2515_s29 }
 0x470   : > { %1409 = vrot.lane.b32.xlu1 %v2833_v45, %s2516_s26  ;;  %s3096_s26 = sld [smem:[#allocation22_spill]] (!%p2117_p5) }
 0x476   : > { %s3099_s21 = scalar_lea.vmem (!%p2117_p5), [#allocation5], %s3096_s26 }
 0x479   : > { %1079 = vrot.lane.b32.xlu0 %v2833_v45, %s2517_s25  ;;  %v2257_v45 = vpack.c.bf16 %v1502_v44, %v1501_v43 }
 0x47b   : > { %2258 = vmatpush3.bf16.msra.mxu1 %v2257_v45 }
 0x47c   : > { %2262 = vmatprep.subr.bf16.mxu1 %v2504_v33 }
 0x4df   : > { %v911_v23 = vpop.xlane.xlu1 %910 }
 0x4e0   : > { %2379 = vrcp.f32 %v911_v23  ;;  %v1704_v23 = vld [vmem:[%s2731_s27 + $0x38] sm:$0xff] }
 0x4e3   : > { %v1076_v25 = vpop.xlane.xlu0 %1075 }
 0x4e4   : > { %2381 = vrcp.f32 %v1076_v25  ;;  %v2272_v25 = vpack.c.bf16 %v1704_v23, %v1703_v22 }
 0x4e8   : > { %v1241_v26 = vpop.xlane.xlu1 %1240 }
 0x4e9   : > { %2383 = vrcp.f32 %v1241_v26  ;;  %v2113_v26 = vld [vmem:[%s3091_s10] ss:$0 sm:$0xff] }
 0x4ea   : > { %v2380_v27 = vpop.eup %2379 }
 0x4eb   : > { %v913_v28 = vmul.f32 %v2380_v27, %v2372_v12 }
 0x4ec   : > { %v1245_v32 = vpop.permute.xlu1 %1244 }
 0x4ed   : > { %2181 = vmatmul.mubr.msk.f32.vlgmr.msra.gmra.mrb[4].mxu0 %vm902_vm4, %v913_v28 }
 0x4ee   : > { %2190 = vmatprep.mubr.msk.f32.mxu0 %vm2505_vm2, %v2506_v35  ;;  %v2382_v30 = vpop.eup %2381 }
 0x4ef   : > { %v1078_v31 = vmul.f32 %v2382_v30, %v2374_v16  ;;  %v1699_v16 = vld [vmem:[%s2731_s27 + $0x10] sm:$0xff] }
 0x4f0   : > { %v1406_v29 = vpop.xlane.xlu0 %1405  ;;  %v1410_v38 = vpop.permute.xlu1 %1409  ;;  %v2266_v18 = vpack.c.bf16 %v1700_v17, %v1699_v16 }
 0x4f1   : > { %2385 = vrcp.f32 %v1406_v29 }
 0x4f3   : > { %v2384_v36 = vpop.eup %2383 }
 0x4f4   : > { %v1080_v34 = vpop.permute.xlu0 %1079  ;;  %v1243_v37 = vmul.f32 %v2384_v36, %v2376_v19  ;;  %v1701_v19 = vld [vmem:[%s2731_s27 + $0x20] sm:$0xff] }
 0x4f5   : > { %2189 = vmatpush3.msra.mxu0 %v1080_v34 }
 0x4f6   : > { %2191 = vmatmul.mubr.msk.f32.vlgmr.msra.gmra.mrb[6].mxu0 %vm902_vm4, %v1078_v31  ;;  %2198 = vmatprep.subr.mxu0 %v2506_v35 }
 0x4f7   : > { %2199 = vmatpush3.msra.mxu0 %v1245_v32  ;;  %2200 = vmatprep.mubr.msk.f32.mxu0 %vm2505_vm2, %v2506_v35 }
 0x4f8   : > { %2208 = vmatprep.subr.mxu0 %v2506_v35 }
 0x4fa   : > { %2201 = vmatmul.mubr.msk.f32.vlgmr.msra.gmra.mrb[8].mxu0 %vm902_vm4, %v1243_v37 }
 0x4fb   : > { %v2386_v39 = vpop.eup %2385  ;;  %2209 = vmatpush3.msra.mxu0 %v1410_v38  ;;  %2210 = vmatprep.mubr.msk.f32.mxu0 %vm2505_vm2, %v2506_v35 }
 0x4fc   : > { %v1408_v40 = vmul.f32 %v2386_v39, %v2378_v21  ;;  %2259 = vmatprep.subr.bf16.mxu0 %v2504_v33  ;;  %v2269_v21 = vpack.c.bf16 %v1702_v20, %v1701_v19 }
 0x4fe   : > { %2211 = vmatmul.mubr.msk.f32.vlgmr.msra.gmra.mrb[10].mxu0 %vm902_vm4, %v1408_v40  ;;  %v2115_v40 = vld [vmem:[%s3093_s30] ss:$0 sm:$0xff] }
 0x4ff   : > { %2224 = vmatprep.mubr.msk.f32.mxu0 %vm2505_vm2, %v2506_v35 }
 0x5c0   : > { %v986_v41 = vpop.f32.mrb[4].mxu0 }
 0x5c1   : > { %v2182_v42 = vpop.f32.mrb[5].mxu0 }
 0x5c9   : > { %v1151_v46 = vpop.f32.mrb[6].mxu0 }
 0x5ca   : > { %1486 = vrot.lane.b32.xlu0 %v1151_v46, %s2518_s28  ;;  %v2192_v47 = vpop.f32.mrb[7].mxu0 }
 0x5cd   : > { %v1316_v48 = vpop.f32.mrb[8].mxu0 }
 0x5ce   : > { %1490 = vrot.lane.b32.xlu1 %v1316_v48, %s2519_s23  ;;  %v2202_v49 = vpop.f32.mrb[9].mxu0  ;;  %s3097_s23 = sld [smem:[#allocation31_spill]] (!%p2117_p5) }
 0x5d1   : > { %v1481_v50 = vpop.f32.mrb[10].mxu0 }
 0x5d2   : > { %1494 = vrot.lane.b32.xlu0 %v1481_v50, %s2520_s18  ;;  %v2212_v51 = vpop.f32.mrb[11].mxu0 }
 0x5d3   : > { %v1821_v51 = vld [vmem:[%s3095_s24] sm:$0xff] (!%p2117_p5) }
 0x63c   : > { %v1487_v52 = vpop.permute.xlu0 %1486 }
 0x63d   : > { %v1497_v54 = vsel %vm827_vm3, %v986_v41, %v1487_v52  ;;  %v1822_v52 = vld [vmem:[%s3095_s24 + $0x8] sm:$0xff] (!%p2117_p5) }
 0x640   : > { %v1491_v53 = vpop.permute.xlu1 %1490 }
 0x641   : > { %v1498_v55 = vsel %vm902_vm4, %v1497_v54, %v1491_v53  ;;  %v2521_v53 = vmov (!%p2117_p5), 0.0|0.0   ;;  %v2275_v54 = vpack.c.bf16 (!%p2117_p5), %v1822_v52, %v1821_v51 }
 0x644   : > { %v1495_v56 = vpop.permute.xlu0 %1494 }
 0x645   : > { %v1500_v57 = vsel %vm1499_vm5, %v1498_v55, %v1495_v56  ;;  %v2523_v55 = vmov (!%p2117_p5), 0.0  }
 0x646   : > { %2218 = vmatmul.mubr.msk.f32.vlgmr.msra.gmra.mrb[6].mxu1 %vm720_vm1, %v1500_v57 }
 0x647   : > { %2243 = vmatprep.mubr.msk.f32.mxu1 %vm2505_vm2, %v2506_v35  ;;  %v1606_v35 = vld [vmem:[%s2721_s15] sm:$0xff]  ;;  %2264 = vmatpush3.bf16.msra.mxu1 %v2263_v15 }
 0x648   : > { %2265 = vmatprep.subr.bf16.mxu1 %v2504_v33 }
 0x64b   : > { %2267 = vmatpush3.bf16.msra.mxu1 %v2266_v18 }
 0x64c   : > { %2268 = vmatprep.subr.bf16.mxu1 %v2504_v33 }
 0x64f   : > { %2270 = vmatpush3.bf16.msra.mxu1 %v2269_v21 }
 0x650   : > { %2271 = vmatprep.subr.bf16.mxu1 %v2504_v33 }
 0x653   : > { %2273 = vmatpush3.bf16.msra.mxu1 %v2272_v25 }
 0x719   : > { %v1572_v58 = vpop.f32.mrb[6].mxu1 }
 0x71a   : > { %v2900_v59 = vadd.f32 %v1572_v58, %v2805_v24  ;;  %v2219_v60 = vpop.f32.mrb[7].mxu1  ;;  %v1607_v24 = vld [vmem:[%s2721_s15 + $0x8] sm:$0xff]  ;;  %s3089_s15 = scalar_lea.vmem %s3023_s8, %s2689_s0 }
 0x71b   : > { %v2260_v3 = vpack.c.bf16 %v1607_v24, %v1606_v35  ;;  %v2112_v10 = vld [vmem:[%s3089_s15] ss:$0 sm:$0xff] }
 0x71c   : > { %v1579_v61 = vsel %vm720_vm1, %v2900_v59, 0.0  ;;  %v2118_v60 = vld [vmem:[%s3097_s23] ss:$0 sm:$0xff] (!%p2117_p5) }
 0x71d   : > { %1580 = vadd.xlane.f32.xlu1 %v1579_v61  ;;  %2261 = vmatpush3.bf16.msra.mxu0 %v2260_v3 }
 0x71e   : > { %2274 = vmatprep.subr.bf16.mxu0 (!%p2117_p5), %v2521_v53 }
 0x7aa   : > { %v1581_v62 = vpop.xlane.xlu1 %1580 }
 0x7ab   : > { %v1582_v63 = vmul.f32 0.0625, %v1581_v62  ;;  %v2119_v62 = vld [vmem:[%s3098_s5] ss:$0 sm:$0xff] (!%p2117_p5) }
 0x7ad   : > { %v1583_v0 = vsub.f32 %v2900_v59, %v1582_v63 }
 0x7af   : > { %v1584_v1 = vmul.f32 %v1583_v0, %v1583_v0 }
 0x7b1   : > { %v1585_v2 = vsel %vm720_vm1, %v1584_v1, 0.0 }
 0x7b2   : > { %1586 = vadd.xlane.f32.xlu0 %v1585_v2 }
 0x83f   : > { %v1587_v4 = vpop.xlane.xlu0 %1586 }
 0x840   : > { %v1588_v5 = vmul.f32 0.0625, %v1587_v4 }
 0x842   : > { %v1589_v6 = vadd.f32 1e-05, %v1588_v5 }
 0x844   : > { %2387 = vrsqrt.f32 %v1589_v6 }
 0x84e   : > { %v2388_v7 = vpop.eup %2387 }
 0x84f   : > { %v1591_v9 = vmul.f32 %v2388_v7, %v1583_v0 }
 0x851   : > { %v1598_v11 = vmul.f32 %v2111_v8, %v1591_v9 }
 0x853   : > { %v1605_v12 = vadd.f32 %v2112_v10, %v1598_v11 }
 0x855   : > { %2225 = vmatmul.mubr.msk.f32.vlgmr.msra.gmra.mrb[12].mxu0 %vm720_vm1, %v1605_v12 }
 0x856   : > { %2250 = vmatprep.mubr.msk.f32.mxu0 (!%p2117_p5), %vm2522_vm7, %v2523_v55  ;;  %2276 = vmatpush3.bf16.msra.mxu0 (!%p2117_p5), %v2275_v54 }
 0x928   : > { %v1684_v27 = vpop.f32.mrb[12].mxu0 }
 0x929   : > { %v1685_v28 = vadd.f32 %v2113_v26, %v1684_v27  ;;  %v2226_v29 = vpop.f32.mrb[13].mxu0 }
 0x92b   : > { %v1689_v30 = vmul.f32 0.044715, %v1685_v28  ;;  %v1688_v38 = vmul.f32 0.5, %v1685_v28 }
 0x92d   : > { %v1690_v31 = vmul.f32 %v1689_v30, %v1685_v28 }
 0x92f   : > { %v1691_v32 = vmul.f32 %v1690_v31, %v1685_v28 }
 0x931   : > { %v1692_v34 = vadd.f32 %v1691_v32, %v1685_v28 }
 0x933   : > { %v1693_v36 = vmul.f32 0.7978846, %v1692_v34 }
 0x935   : > { %2389 = vtanh.f32 %v1693_v36 }
 0x93f   : > { %v2390_v37 = vpop.eup %2389 }
 0x940   : > { %v1695_v39 = vadd.f32 1.0, %v2390_v37 }
 0x942   : > { %v1696_v33 = vmul.f32 %v1695_v39, %v1688_v38 }
 0x944   : > { %2244 = vmatmul.mubr.msk.f32.vlgmr.msra.gmra.mrb[8].mxu1 %vm1712_vm6, %v1696_v33 }
 0xa16   : > { %1791 = sbr.rel (%p2117_p5) target bundleno = 3114 (0xc2a), region = 88 }
 0xa17   : > { %v1782_v41 = vpop.f32.mrb[8].mxu1 }
 0xa18   : > { %v1783_v42 = vadd.f32 %v2115_v40, %v1782_v41  ;;  %v2245_v43 = vpop.f32.mrb[9].mxu1 }
 0xa1a   : > { %v1786_v44 = vadd.f32 %v1783_v42, %v2900_v59 }
 0xa1c   : > { %1787 = vst.msk [vmem:[#allocation2] sm:$0xff] %vm720_vm1, %v1786_v44  ;;  %v1794_v45 = vsel (!%p2117_p5), %vm720_vm1, %v1786_v44, 0.0 }
 0xa1d   : > { %1795 = vadd.xlane.f32.xlu0 %v1794_v45 }
 0xaaa   : > { %v1796_v46 = vpop.xlane.xlu0 %1795 }
 0xaab   : > { %v1797_v47 = vmul.f32 0.0625, %v1796_v46 }
 0xaad   : > { %v1798_v48 = vsub.f32 %v1786_v44, %v1797_v47 }
 0xaaf   : > { %v1799_v49 = vmul.f32 %v1798_v48, %v1798_v48 }
 0xab1   : > { %v1800_v50 = vsel %vm720_vm1, %v1799_v49, 0.0 }
 0xab2   : > { %1801 = vadd.xlane.f32.xlu0 %v1800_v50 }
 0xb3f   : > { %v1802_v56 = vpop.xlane.xlu0 %1801 }
 0xb40   : > { %v1803_v57 = vmul.f32 0.0625, %v1802_v56 }
 0xb42   : > { %v1804_v58 = vadd.f32 1e-05, %v1803_v57 }
 0xb44   : > { %2391 = vrsqrt.f32 %v1804_v58 }
 0xb4e   : > { %v2392_v59 = vpop.eup %2391 }
 0xb4f   : > { %v1806_v61 = vmul.f32 %v2392_v59, %v1798_v48 }
 0xb51   : > { %v1813_v63 = vmul.f32 %v2118_v60, %v1806_v61 }
 0xb53   : > { %v1820_v0 = vadd.f32 %v2119_v62, %v1813_v63 }
 0xb55   : > { %2251 = vmatmul.mubr.msk.f32.vlgmr.msra.gmra.mrb[0].mxu0 %vm720_vm1, %v1820_v0 }
 0xc28   : > { %v1892_v1 = vpop.f32.mrb[0].mxu0 }
 0xc29   : > { %1896 = vst [vmem:[%s3099_s21] sm:$0xff] %v1892_v1  ;;  %v2252_v2 = vpop.f32.mrb[1].mxu0 }
 0xc2a PF: > { %s3100_s17 = sld [smem:[#allocation13_spill]]  ;;  %s3101_s19 = sld [smem:[#allocation22_spill]] }
 0xc2b   : > { %s3102_s15 = sld [smem:[#allocation10_spill]]  ;;  %s3104_s27 = sld [smem:[#allocation34_spill]] }
 0xc2c   : > { %s2524_s29 = smov [#allocation5]  }
 0xc2d   : > { %s2409_s26 = sshll.u32 %s2524_s29, 4  ;;  %s2410_s26 = int_to_ptr.vmem [resolvable:$false] %s2409_s26 }
 0xc2e   : > { %s2411_s25 = scalar_lea.vmem %s2410_s26, 256 }
 0xc30   : > { %s2122_s11 = sshll.u32 %s3100_s17, 7  ;;  %s3106_s30 = scalar_lea.vmem [#allocation5], %s3101_s19 }
 0xc31   : > { %s3105_s6 = smov %s3104_s27  ;;  %s2964_s9 = scalar_lea.hbm %s3104_s27, %s2122_s11 }
 0xc32   : > { %s1911_s13 = sshll.u32 %s3106_s30, 4  ;;  %s3107_s0 = sand.u32 1, %s3102_s15   ;;  %s1912_s13 = int_to_ptr.vmem [resolvable:$true] %s1911_s13 }
 0xc33   : > { %s1898_s12 = scalar_lea.sflag [#allocation6], %s3107_s0  ;;  %s2405_s1 = scalar_lea.vmem %s1912_s13, 128 }
 0xc34   : > { %p2406_p6 = scmp.ne.s32.totalorder %s1912_s13, %s2405_s1  ;;  %p2412_p10 = scmp.lt.s32.totalorder %s1912_s13, %s2410_s26 }
 0xc35   : > { %p2413_p11 = scmp.lt.s32.totalorder %s2411_s25, %s2405_s1 }
 0xc36   : > { %p2407_p7 = pnand %p2406_p6, %p2662_p8 }
 0xc37   : > { %p2414_p12 = por %p2413_p11, %p2412_p10 }
 0xc38   : > { %p2408_p9 = pneg %p2407_p7 }
 0xc3a   : > { %p2415_p13 = pnand %p2414_p12, %p2408_p9 }
 0xc3c   : > { %2418 = shalt.err (!%p2415_p13)
}
 0xc3d   : > { %s2419_s28 = scalar_lea.hbm %s2964_s9, 128  ;;  %s2423_s14 = scalar_lea.hbm %s3105_s6, 256 }
 0xc3e   : > { %p2420_p1 = scmp.ne.s32.totalorder %s2964_s9, %s2419_s28  ;;  %p2424_p4 = scmp.lt.u32.totalorder %s2964_s9, %s3105_s6 }
 0xc3f   : > { %p2425_p5 = scmp.lt.u32.totalorder %s2423_s14, %s2419_s28  ;;  %p2427_p7 = scmp.lt.u32.totalorder %s2419_s28, %s2964_s9 }
 0xc40   : > { %p2421_p2 = pnand %p2420_p1, %p2662_p8 }
 0xc41   : > { %p2426_p6 = por %p2425_p5, %p2424_p4 }
 0xc42   : > { %p2422_p3 = pneg %p2421_p2 }
 0xc43   : > { %p2428_p9 = por %p2427_p7, %p2426_p6 }
 0xc45   : > { %p2429_p10 = pnand %p2428_p9, %p2422_p3 }
 0xc47   : > { %2432 = shalt.err (!%p2429_p10)
}
 0xc48   : > { %2277 = dma.vmem_to_hbm [thread:$0]  (%p2662_p8), %s1912_s13, 128, %s2964_s9, %s1898_s12  }
 0xc49 PF: > { %s3108_s17 = sld [smem:[#allocation16_spill]]  ;;  %s3109_s19 = sld [smem:[#allocation9_spill]] }
 0xc4f   : > { %p2283_p11 = scmp.ge.s32.totalorder %s3108_s17, 2  ;;  %s1923_s11 = sand.u32 1, %s3109_s19  }
 0xc50   : > { %s1924_s22 = scalar_lea.sflag [#allocation6], %s1923_s11 }
 0xc51   : > { %p2280_p12 = pnand %p2283_p11, %p2672_p0 }
 0xc53   : > { %2468 = dma.done.wait (!%p2280_p12), %s1924_s22, 128  }
 0xc54   : > { %2470 = vsyncadd (!%p2280_p12), %s1924_s22, 4294967168  ;;  %s35_s1 = sadd.s32 1, %s3108_s17   ;;  %s3111_s26 = sld [smem:[#allocation10_spill]] }
 0xc55   : > { %p32_p13 = scmp.ge.s32.totalorder %s35_s1, 6   ;;  %s3112_s27 = sld [smem:[#allocation11_spill]] }
 0xc56   : > { %s3113_s28 = sld [smem:[#allocation21_spill]]  ;;  %s3114_s29 = sld [smem:[#allocation14_spill]] }
 0xc57   : > { %s3115_s30 = sld [smem:[#allocation15_spill]]  ;;  %s3116_s0 = sld [smem:[#allocation17_spill]] }
 0xc58   : > { %s3117_s17 = sld [smem:[#allocation19_spill]]  ;;  %34 = sbr.rel (!%p32_p13) target bundleno = 29 (0x1d), region = 158 }
 0xc5f   :  { %1929 = vsyncpa [#allocation6], 1 }
 0xc60   :  { %1931 = vsyncpa [#allocation6 + $0x1], 1 }

</bundles_post_ra>
